<compile_context>
chip_gen: v7x
topology: tpu7x:2x2x1
jax: 0.10.0
libtpu: 0.0.40
codegen_flags: <defaults>
</compile_context>

<pallas_src>
import functools

import jax
import jax.numpy as jnp
from jax import lax
from jax.experimental import pallas as pl
from jax.experimental.pallas import tpu as pltpu

_INV_SQRT2 = 0.7071067811865476


# --------------------------------------------------------------------------
# One-time parameter packing (bind-time, NOT per-forward).
# Slab layout along lanes (row r = b*C + c):
#   [0      , R      ) : w1_big  columns (block-diag kron(I_B, w1))
#   [R      , 2R     ) : w2_big  columns
#   [2R     , 2R+T   ) : k0 taps (depthwise filter for out channel 2c)
#   [2R+T   , 2R+2T  ) : k1 taps (depthwise filter for out channel 2c+1)
#   [2R+2T  , 2R+2T+4) : biases  [b1, bk0, bk1, b2]
#   remainder          : zero padding up to a multiple of 128 lanes
# --------------------------------------------------------------------------
def pack_params(w1, b1, kdw, bdw, w2, b2, batch_size):
    C = w1.shape[0]
    KS = kdw.shape[-1]
    T = KS * KS

    k0 = kdw[0::2, 0].reshape(C, T)          # (C, T) filter for out chan 2c
    k1 = kdw[1::2, 0].reshape(C, T)          # (C, T) filter for out chan 2c+1
    bk0 = bdw[0::2, None]                    # (C, 1)
    bk1 = bdw[1::2, None]                    # (C, 1)

    eye_b = jnp.eye(batch_size, dtype=jnp.float32)
    w1_big = jnp.kron(eye_b, w1.astype(jnp.float32))      # (R, R) block-diag
    w2_big = jnp.kron(eye_b, w2.astype(jnp.float32))
    biases = jnp.concatenate([b1, bk0, bk1, b2], axis=1)   # (C, 4)

    slab = jnp.concatenate(
        [w1_big,
         w2_big,
         jnp.tile(k0, (batch_size, 1)),
         jnp.tile(k1, (batch_size, 1)),
         jnp.tile(biases, (batch_size, 1))], axis=1).astype(jnp.float32)

    used = slab.shape[1]
    lanes = max(128, ((used + 127) // 128) * 128)
    return jnp.pad(slab, ((0, 0), (0, lanes - used)))


def _build_kernel(B, C, H, W, KS):
    R = B * C              # rows  (sublane axis)
    P = H * W              # lanes (flattened spatial, lane-dense)
    PAD = KS // 2
    T = KS * KS
    OFF_W1 = 0
    OFF_W2 = R
    OFF_K0 = 2 * R
    OFF_K1 = 2 * R + T
    OFF_B = 2 * R + 2 * T

    def kernel(x_ref, p_ref, o_ref):
        X = x_ref[...]                        # (R, P) f32
        PRM = p_ref[...]                      # (R, 128) packed parameters

        def col(off):                          # (R, 1) lane-broadcast column
            return PRM[:, off:off + 1]

        def channel_mix(woff, v, boff):
            # block-diagonal (R, R) @ (R, P) + bias, as R exact-f32 VPU
            # broadcast-FMA passes (MXU gain marginal at C=4; see header).
            acc = jnp.zeros((R, P), jnp.float32)
            for k in range(R):
                acc = acc + col(woff + k) * v[k:k + 1, :]
            return acc + col(boff)

        # ---- 1x1 conv #1 (pointwise channel mix) ----
        y = channel_mix(OFF_W1, X, OFF_B + 0)

        # ---- depthwise 7x7 conv (pad=3), separable roll factoring ----
        p_idx = lax.broadcasted_iota(jnp.int32, (R, P), 1)
        w_idx = p_idx & (W - 1)               # w coordinate (W is pow2)

        # column-offset pass: u[j][r, p] = wm_j[p] * y[r, (p + dj) mod P]
        # shared by BOTH output filters (6 rolls + 6 selects total).
        u = []
        for j in range(KS):
            dj = j - PAD
            if dj == 0:
                u.append(y)
            else:
                uj = pltpu.roll(y, shift=(-dj) % P, axis=1)
                wm = (w_idx >= -dj) if dj < 0 else (w_idx < W - dj)
                u.append(jnp.where(wm, uj, 0.0))

        # row-offset pass: reduce over j first, then one roll per (i, filter).
        acc0 = jnp.zeros((R, P), jnp.float32)
        acc1 = jnp.zeros((R, P), jnp.float32)
        for i in range(KS):
            di = i - PAD
            inner0 = jnp.zeros((R, P), jnp.float32)
            inner1 = jnp.zeros((R, P), jnp.float32)
            for j in range(KS):
                t = i * KS + j
                inner0 = inner0 + col(OFF_K0 + t) * u[j]
                inner1 = inner1 + col(OFF_K1 + t) * u[j]
            if di != 0:
                sh = (-di * W) % P
                inner0 = pltpu.roll(inner0, shift=sh, axis=1)
                inner1 = pltpu.roll(inner1, shift=sh, axis=1)
                hm = (p_idx >= (-di) * W) if di < 0 else (p_idx < (H - di) * W)
                inner0 = jnp.where(hm, inner0, 0.0)
                inner1 = jnp.where(hm, inner1, 0.0)
            acc0 = acc0 + inner0
            acc1 = acc1 + inner1

        z0 = acc0 + col(OFF_B + 1)
        z1 = acc1 + col(OFF_B + 2)

        # ---- gate: exact (erf) GELU * sigmoid ----
        gated = 0.5 * z0 * (1.0 + lax.erf(z0 * _INV_SQRT2))
        gated = gated * jax.nn.sigmoid(z1)

        # ---- 1x1 conv #2 (post_conv) ----
        out = channel_mix(OFF_W2, gated, OFF_B + 3)
        o_ref[...] = out.astype(o_ref.dtype)

    return kernel


@functools.partial(jax.jit, static_argnames=("ks",))
def dual_adaptive_neural_block(x, params, ks=7):
    """x: (B, C, H, W) f32, params: packed slab from pack_params()."""
    B, C, H, W = x.shape
    R, P = B * C, H * W
    assert W & (W - 1) == 0, "W must be a power of two (in-kernel index trick)"

    kernel = _build_kernel(B, C, H, W, ks)
    out_flat = pl.pallas_call(
        kernel,
        out_shape=jax.ShapeDtypeStruct((R, P), x.dtype),
    )(x.reshape(R, P), params)
    # grid=() on purpose: at (8, 256) the kernel is launch/overhead bound.
    # For much larger B*C or H*W, add a leading row-block grid axis with
    # dimension_semantics=("parallel",) so v7x's two TensorCores share work.
    return out_flat.reshape(B, C, H, W)


def reference_forward(x, w1, b1, kdw, bdw, w2, b2):
    """Pure-JAX reference of the PyTorch module (exact-erf gelu)."""
    C = w1.shape[0]
    dn = ("NCHW", "OIHW", "NCHW")
    y = lax.conv_general_dilated(
        x, w1[:, :, None, None], (1, 1), "VALID", dimension_numbers=dn,
        precision=lax.Precision.HIGHEST) + b1.reshape(1, C, 1, 1)
    z = lax.conv_general_dilated(
        y, kdw, (1, 1), ((3, 3), (3, 3)), dimension_numbers=dn,
        feature_group_count=C,
        precision=lax.Precision.HIGHEST) + bdw.reshape(1, 2 * C, 1, 1)
    x0 = z[:, 0::2]
    x1 = z[:, 1::2]
    g = jax.nn.gelu(x0, approximate=False) * jax.nn.sigmoid(x1)
    out = lax.conv_general_dilated(
        g, w2[:, :, None, None], (1, 1), "VALID", dimension_numbers=dn,
        precision=lax.Precision.HIGHEST) + b2.reshape(1, C, 1, 1)
    return out


if __name__ == "__main__":
    B, C, H, W = 2, 4, 16, 16
    KS = 7

    key = jax.random.PRNGKey(0)
    ks = jax.random.split(key, 7)
    # parameters with shapes matching the PyTorch module
    w1 = jax.random.normal(ks[0], (C, C), jnp.float32) * 0.2            # Conv2d(C,C,1)
    b1 = jax.random.normal(ks[1], (C, 1), jnp.float32) * 0.1
    kdw = jax.random.normal(ks[2], (2 * C, 1, KS, KS), jnp.float32) * 0.1  # grouped 7x7
    bdw = jax.random.normal(ks[3], (2 * C,), jnp.float32) * 0.1
    w2 = jax.random.normal(ks[4], (C, C), jnp.float32) * 0.2            # post_conv 1x1
    b2 = jax.random.normal(ks[5], (C, 1), jnp.float32) * 0.1
    x = jax.random.normal(ks[6], (B, C, H, W), jnp.float32)

    # bind-time packing (done ONCE; per-call path only reshapes x)
    params = pack_params(w1, b1, kdw, bdw, w2, b2, B)
    params = jax.block_until_ready(params)

    out = dual_adaptive_neural_block(x, params)
    out = jax.block_until_ready(out)
    assert out.shape == (B, C, H, W)

    ref = reference_forward(x, w1, b1, kdw, bdw, w2, b2)
    err = float(jnp.max(jnp.abs(out - ref)))
    assert err < 1e-3, f"kernel/reference mismatch: max abs err = {err}"
    print("KERNEL_OK")
</pallas_src>

<mosaic_0001>
module attributes {stable_mosaic.version = 11 : i64} {
  func.func @kernel(%arg0: memref<8x256xf32, #tpu.memory_space<vmem>>, %arg1: memref<8x128xf32, #tpu.memory_space<vmem>>, %arg2: memref<8x256xf32, #tpu.memory_space<vmem>>) attributes {dimension_semantics = [], scalar_prefetch = 0 : i64, scratch_operands = 0 : i64, tpu.core_type = #tpu.core_type<tc>} {
    %c0 = arith.constant 0 : index
    %c0_0 = arith.constant 0 : index
    %0 = vector.load %arg0[%c0, %c0_0] : memref<8x256xf32, #tpu.memory_space<vmem>>, vector<8x256xf32>
    %c0_1 = arith.constant 0 : index
    %c0_2 = arith.constant 0 : index
    %1 = vector.load %arg1[%c0_1, %c0_2] : memref<8x128xf32, #tpu.memory_space<vmem>>, vector<8x128xf32>
    %cst = arith.constant 0.000000e+00 : f32
    %2 = vector.broadcast %cst : f32 to vector<8x256xf32>
    %3 = vector.extract_strided_slice %1 {offsets = [0, 0], sizes = [8, 1], strides = [1, 1]} : vector<8x128xf32> to vector<8x1xf32>
    %4 = vector.extract_strided_slice %0 {offsets = [0, 0], sizes = [1, 256], strides = [1, 1]} : vector<8x256xf32> to vector<1x256xf32>
    %5 = vector.broadcast %3 : vector<8x1xf32> to vector<8x256xf32>
    %6 = vector.broadcast %4 : vector<1x256xf32> to vector<8x256xf32>
    %7 = arith.mulf %5, %6 : vector<8x256xf32>
    %8 = arith.addf %2, %7 : vector<8x256xf32>
    %9 = vector.extract_strided_slice %1 {offsets = [0, 1], sizes = [8, 1], strides = [1, 1]} : vector<8x128xf32> to vector<8x1xf32>
    %10 = vector.extract_strided_slice %0 {offsets = [1, 0], sizes = [1, 256], strides = [1, 1]} : vector<8x256xf32> to vector<1x256xf32>
    %11 = vector.broadcast %9 : vector<8x1xf32> to vector<8x256xf32>
    %12 = vector.broadcast %10 : vector<1x256xf32> to vector<8x256xf32>
    %13 = arith.mulf %11, %12 : vector<8x256xf32>
    %14 = arith.addf %8, %13 : vector<8x256xf32>
    %15 = vector.extract_strided_slice %1 {offsets = [0, 2], sizes = [8, 1], strides = [1, 1]} : vector<8x128xf32> to vector<8x1xf32>
    %16 = vector.extract_strided_slice %0 {offsets = [2, 0], sizes = [1, 256], strides = [1, 1]} : vector<8x256xf32> to vector<1x256xf32>
    %17 = vector.broadcast %15 : vector<8x1xf32> to vector<8x256xf32>
    %18 = vector.broadcast %16 : vector<1x256xf32> to vector<8x256xf32>
    %19 = arith.mulf %17, %18 : vector<8x256xf32>
    %20 = arith.addf %14, %19 : vector<8x256xf32>
    %21 = vector.extract_strided_slice %1 {offsets = [0, 3], sizes = [8, 1], strides = [1, 1]} : vector<8x128xf32> to vector<8x1xf32>
    %22 = vector.extract_strided_slice %0 {offsets = [3, 0], sizes = [1, 256], strides = [1, 1]} : vector<8x256xf32> to vector<1x256xf32>
    %23 = vector.broadcast %21 : vector<8x1xf32> to vector<8x256xf32>
    %24 = vector.broadcast %22 : vector<1x256xf32> to vector<8x256xf32>
    %25 = arith.mulf %23, %24 : vector<8x256xf32>
    %26 = arith.addf %20, %25 : vector<8x256xf32>
    %27 = vector.extract_strided_slice %1 {offsets = [0, 4], sizes = [8, 1], strides = [1, 1]} : vector<8x128xf32> to vector<8x1xf32>
    %28 = vector.extract_strided_slice %0 {offsets = [4, 0], sizes = [1, 256], strides = [1, 1]} : vector<8x256xf32> to vector<1x256xf32>
    %29 = vector.broadcast %27 : vector<8x1xf32> to vector<8x256xf32>
    %30 = vector.broadcast %28 : vector<1x256xf32> to vector<8x256xf32>
    %31 = arith.mulf %29, %30 : vector<8x256xf32>
    %32 = arith.addf %26, %31 : vector<8x256xf32>
    %33 = vector.extract_strided_slice %1 {offsets = [0, 5], sizes = [8, 1], strides = [1, 1]} : vector<8x128xf32> to vector<8x1xf32>
    %34 = vector.extract_strided_slice %0 {offsets = [5, 0], sizes = [1, 256], strides = [1, 1]} : vector<8x256xf32> to vector<1x256xf32>
    %35 = vector.broadcast %33 : vector<8x1xf32> to vector<8x256xf32>
    %36 = vector.broadcast %34 : vector<1x256xf32> to vector<8x256xf32>
    %37 = arith.mulf %35, %36 : vector<8x256xf32>
    %38 = arith.addf %32, %37 : vector<8x256xf32>
    %39 = vector.extract_strided_slice %1 {offsets = [0, 6], sizes = [8, 1], strides = [1, 1]} : vector<8x128xf32> to vector<8x1xf32>
    %40 = vector.extract_strided_slice %0 {offsets = [6, 0], sizes = [1, 256], strides = [1, 1]} : vector<8x256xf32> to vector<1x256xf32>
    %41 = vector.broadcast %39 : vector<8x1xf32> to vector<8x256xf32>
    %42 = vector.broadcast %40 : vector<1x256xf32> to vector<8x256xf32>
    %43 = arith.mulf %41, %42 : vector<8x256xf32>
    %44 = arith.addf %38, %43 : vector<8x256xf32>
    %45 = vector.extract_strided_slice %1 {offsets = [0, 7], sizes = [8, 1], strides = [1, 1]} : vector<8x128xf32> to vector<8x1xf32>
    %46 = vector.extract_strided_slice %0 {offsets = [7, 0], sizes = [1, 256], strides = [1, 1]} : vector<8x256xf32> to vector<1x256xf32>
    %47 = vector.broadcast %45 : vector<8x1xf32> to vector<8x256xf32>
    %48 = vector.broadcast %46 : vector<1x256xf32> to vector<8x256xf32>
    %49 = arith.mulf %47, %48 : vector<8x256xf32>
    %50 = arith.addf %44, %49 : vector<8x256xf32>
    %51 = vector.extract_strided_slice %1 {offsets = [0, 114], sizes = [8, 1], strides = [1, 1]} : vector<8x128xf32> to vector<8x1xf32>
    %52 = vector.broadcast %51 : vector<8x1xf32> to vector<8x256xf32>
    %53 = arith.addf %50, %52 : vector<8x256xf32>
    %54 = tpu.iota {dimensions = array<i32: 1>} : vector<8x256xi32>
    %c15_i32 = arith.constant 15 : i32
    %55 = vector.broadcast %c15_i32 : i32 to vector<8x256xi32>
    %56 = arith.andi %54, %55 : vector<8x256xi32>
    %c3_i32 = arith.constant 3 : i32
    %57 = tpu.dynamic_rotate %53 by %c3_i32 dim 1 : vector<8x256xf32>, i32 -> vector<8x256xf32>
    %c3_i32_3 = arith.constant 3 : i32
    %58 = vector.broadcast %c3_i32_3 : i32 to vector<8x256xi32>
    %59 = arith.cmpi sge, %56, %58 : vector<8x256xi32>
    %cst_4 = arith.constant 0.000000e+00 : f32
    %60 = vector.broadcast %cst_4 : f32 to vector<8x256xf32>
    %61 = arith.select %59, %57, %60 : vector<8x256xi1>, vector<8x256xf32>
    %c2_i32 = arith.constant 2 : i32
    %62 = tpu.dynamic_rotate %53 by %c2_i32 dim 1 : vector<8x256xf32>, i32 -> vector<8x256xf32>
    %c2_i32_5 = arith.constant 2 : i32
    %63 = vector.broadcast %c2_i32_5 : i32 to vector<8x256xi32>
    %64 = arith.cmpi sge, %56, %63 : vector<8x256xi32>
    %cst_6 = arith.constant 0.000000e+00 : f32
    %65 = vector.broadcast %cst_6 : f32 to vector<8x256xf32>
    %66 = arith.select %64, %62, %65 : vector<8x256xi1>, vector<8x256xf32>
    %c1_i32 = arith.constant 1 : i32
    %67 = tpu.dynamic_rotate %53 by %c1_i32 dim 1 : vector<8x256xf32>, i32 -> vector<8x256xf32>
    %c1_i32_7 = arith.constant 1 : i32
    %68 = vector.broadcast %c1_i32_7 : i32 to vector<8x256xi32>
    %69 = arith.cmpi sge, %56, %68 : vector<8x256xi32>
    %cst_8 = arith.constant 0.000000e+00 : f32
    %70 = vector.broadcast %cst_8 : f32 to vector<8x256xf32>
    %71 = arith.select %69, %67, %70 : vector<8x256xi1>, vector<8x256xf32>
    %c255_i32 = arith.constant 255 : i32
    %72 = tpu.dynamic_rotate %53 by %c255_i32 dim 1 : vector<8x256xf32>, i32 -> vector<8x256xf32>
    %c15_i32_9 = arith.constant 15 : i32
    %73 = vector.broadcast %c15_i32_9 : i32 to vector<8x256xi32>
    %74 = arith.cmpi slt, %56, %73 : vector<8x256xi32>
    %cst_10 = arith.constant 0.000000e+00 : f32
    %75 = vector.broadcast %cst_10 : f32 to vector<8x256xf32>
    %76 = arith.select %74, %72, %75 : vector<8x256xi1>, vector<8x256xf32>
    %c254_i32 = arith.constant 254 : i32
    %77 = tpu.dynamic_rotate %53 by %c254_i32 dim 1 : vector<8x256xf32>, i32 -> vector<8x256xf32>
    %c14_i32 = arith.constant 14 : i32
    %78 = vector.broadcast %c14_i32 : i32 to vector<8x256xi32>
    %79 = arith.cmpi slt, %56, %78 : vector<8x256xi32>
    %cst_11 = arith.constant 0.000000e+00 : f32
    %80 = vector.broadcast %cst_11 : f32 to vector<8x256xf32>
    %81 = arith.select %79, %77, %80 : vector<8x256xi1>, vector<8x256xf32>
    %c253_i32 = arith.constant 253 : i32
    %82 = tpu.dynamic_rotate %53 by %c253_i32 dim 1 : vector<8x256xf32>, i32 -> vector<8x256xf32>
    %c13_i32 = arith.constant 13 : i32
    %83 = vector.broadcast %c13_i32 : i32 to vector<8x256xi32>
    %84 = arith.cmpi slt, %56, %83 : vector<8x256xi32>
    %cst_12 = arith.constant 0.000000e+00 : f32
    %85 = vector.broadcast %cst_12 : f32 to vector<8x256xf32>
    %86 = arith.select %84, %82, %85 : vector<8x256xi1>, vector<8x256xf32>
    %cst_13 = arith.constant 0.000000e+00 : f32
    %87 = vector.broadcast %cst_13 : f32 to vector<8x256xf32>
    %cst_14 = arith.constant 0.000000e+00 : f32
    %88 = vector.broadcast %cst_14 : f32 to vector<8x256xf32>
    %cst_15 = arith.constant 0.000000e+00 : f32
    %89 = vector.broadcast %cst_15 : f32 to vector<8x256xf32>
    %cst_16 = arith.constant 0.000000e+00 : f32
    %90 = vector.broadcast %cst_16 : f32 to vector<8x256xf32>
    %91 = vector.extract_strided_slice %1 {offsets = [0, 16], sizes = [8, 1], strides = [1, 1]} : vector<8x128xf32> to vector<8x1xf32>
    %92 = vector.broadcast %91 : vector<8x1xf32> to vector<8x256xf32>
    %93 = arith.mulf %92, %61 : vector<8x256xf32>
    %94 = arith.addf %89, %93 : vector<8x256xf32>
    %95 = vector.extract_strided_slice %1 {offsets = [0, 65], sizes = [8, 1], strides = [1, 1]} : vector<8x128xf32> to vector<8x1xf32>
    %96 = vector.broadcast %95 : vector<8x1xf32> to vector<8x256xf32>
    %97 = arith.mulf %96, %61 : vector<8x256xf32>
    %98 = arith.addf %90, %97 : vector<8x256xf32>
    %99 = vector.extract_strided_slice %1 {offsets = [0, 17], sizes = [8, 1], strides = [1, 1]} : vector<8x128xf32> to vector<8x1xf32>
    %100 = vector.broadcast %99 : vector<8x1xf32> to vector<8x256xf32>
    %101 = arith.mulf %100, %66 : vector<8x256xf32>
    %102 = arith.addf %94, %101 : vector<8x256xf32>
    %103 = vector.extract_strided_slice %1 {offsets = [0, 66], sizes = [8, 1], strides = [1, 1]} : vector<8x128xf32> to vector<8x1xf32>
    %104 = vector.broadcast %103 : vector<8x1xf32> to vector<8x256xf32>
    %105 = arith.mulf %104, %66 : vector<8x256xf32>
    %106 = arith.addf %98, %105 : vector<8x256xf32>
    %107 = vector.extract_strided_slice %1 {offsets = [0, 18], sizes = [8, 1], strides = [1, 1]} : vector<8x128xf32> to vector<8x1xf32>
    %108 = vector.broadcast %107 : vector<8x1xf32> to vector<8x256xf32>
    %109 = arith.mulf %108, %71 : vector<8x256xf32>
    %110 = arith.addf %102, %109 : vector<8x256xf32>
    %111 = vector.extract_strided_slice %1 {offsets = [0, 67], sizes = [8, 1], strides = [1, 1]} : vector<8x128xf32> to vector<8x1xf32>
    %112 = vector.broadcast %111 : vector<8x1xf32> to vector<8x256xf32>
    %113 = arith.mulf %112, %71 : vector<8x256xf32>
    %114 = arith.addf %106, %113 : vector<8x256xf32>
    %115 = vector.extract_strided_slice %1 {offsets = [0, 19], sizes = [8, 1], strides = [1, 1]} : vector<8x128xf32> to vector<8x1xf32>
    %116 = vector.broadcast %115 : vector<8x1xf32> to vector<8x256xf32>
    %117 = arith.mulf %116, %53 : vector<8x256xf32>
    %118 = arith.addf %110, %117 : vector<8x256xf32>
    %119 = vector.extract_strided_slice %1 {offsets = [0, 68], sizes = [8, 1], strides = [1, 1]} : vector<8x128xf32> to vector<8x1xf32>
    %120 = vector.broadcast %119 : vector<8x1xf32> to vector<8x256xf32>
    %121 = arith.mulf %120, %53 : vector<8x256xf32>
    %122 = arith.addf %114, %121 : vector<8x256xf32>
    %123 = vector.extract_strided_slice %1 {offsets = [0, 20], sizes = [8, 1], strides = [1, 1]} : vector<8x128xf32> to vector<8x1xf32>
    %124 = vector.broadcast %123 : vector<8x1xf32> to vector<8x256xf32>
    %125 = arith.mulf %124, %76 : vector<8x256xf32>
    %126 = arith.addf %118, %125 : vector<8x256xf32>
    %127 = vector.extract_strided_slice %1 {offsets = [0, 69], sizes = [8, 1], strides = [1, 1]} : vector<8x128xf32> to vector<8x1xf32>
    %128 = vector.broadcast %127 : vector<8x1xf32> to vector<8x256xf32>
    %129 = arith.mulf %128, %76 : vector<8x256xf32>
    %130 = arith.addf %122, %129 : vector<8x256xf32>
    %131 = vector.extract_strided_slice %1 {offsets = [0, 21], sizes = [8, 1], strides = [1, 1]} : vector<8x128xf32> to vector<8x1xf32>
    %132 = vector.broadcast %131 : vector<8x1xf32> to vector<8x256xf32>
    %133 = arith.mulf %132, %81 : vector<8x256xf32>
    %134 = arith.addf %126, %133 : vector<8x256xf32>
    %135 = vector.extract_strided_slice %1 {offsets = [0, 70], sizes = [8, 1], strides = [1, 1]} : vector<8x128xf32> to vector<8x1xf32>
    %136 = vector.broadcast %135 : vector<8x1xf32> to vector<8x256xf32>
    %137 = arith.mulf %136, %81 : vector<8x256xf32>
    %138 = arith.addf %130, %137 : vector<8x256xf32>
    %139 = vector.extract_strided_slice %1 {offsets = [0, 22], sizes = [8, 1], strides = [1, 1]} : vector<8x128xf32> to vector<8x1xf32>
    %140 = vector.broadcast %139 : vector<8x1xf32> to vector<8x256xf32>
    %141 = arith.mulf %140, %86 : vector<8x256xf32>
    %142 = arith.addf %134, %141 : vector<8x256xf32>
    %143 = vector.extract_strided_slice %1 {offsets = [0, 71], sizes = [8, 1], strides = [1, 1]} : vector<8x128xf32> to vector<8x1xf32>
    %144 = vector.broadcast %143 : vector<8x1xf32> to vector<8x256xf32>
    %145 = arith.mulf %144, %86 : vector<8x256xf32>
    %146 = arith.addf %138, %145 : vector<8x256xf32>
    %c48_i32 = arith.constant 48 : i32
    %147 = tpu.dynamic_rotate %142 by %c48_i32 dim 1 : vector<8x256xf32>, i32 -> vector<8x256xf32>
    %c48_i32_17 = arith.constant 48 : i32
    %148 = tpu.dynamic_rotate %146 by %c48_i32_17 dim 1 : vector<8x256xf32>, i32 -> vector<8x256xf32>
    %c48_i32_18 = arith.constant 48 : i32
    %149 = vector.broadcast %c48_i32_18 : i32 to vector<8x256xi32>
    %150 = arith.cmpi sge, %54, %149 : vector<8x256xi32>
    %cst_19 = arith.constant 0.000000e+00 : f32
    %151 = vector.broadcast %cst_19 : f32 to vector<8x256xf32>
    %152 = arith.select %150, %147, %151 : vector<8x256xi1>, vector<8x256xf32>
    %cst_20 = arith.constant 0.000000e+00 : f32
    %153 = vector.broadcast %cst_20 : f32 to vector<8x256xf32>
    %154 = arith.select %150, %148, %153 : vector<8x256xi1>, vector<8x256xf32>
    %155 = arith.addf %87, %152 : vector<8x256xf32>
    %156 = arith.addf %88, %154 : vector<8x256xf32>
    %cst_21 = arith.constant 0.000000e+00 : f32
    %157 = vector.broadcast %cst_21 : f32 to vector<8x256xf32>
    %cst_22 = arith.constant 0.000000e+00 : f32
    %158 = vector.broadcast %cst_22 : f32 to vector<8x256xf32>
    %159 = vector.extract_strided_slice %1 {offsets = [0, 23], sizes = [8, 1], strides = [1, 1]} : vector<8x128xf32> to vector<8x1xf32>
    %160 = vector.broadcast %159 : vector<8x1xf32> to vector<8x256xf32>
    %161 = arith.mulf %160, %61 : vector<8x256xf32>
    %162 = arith.addf %157, %161 : vector<8x256xf32>
    %163 = vector.extract_strided_slice %1 {offsets = [0, 72], sizes = [8, 1], strides = [1, 1]} : vector<8x128xf32> to vector<8x1xf32>
    %164 = vector.broadcast %163 : vector<8x1xf32> to vector<8x256xf32>
    %165 = arith.mulf %164, %61 : vector<8x256xf32>
    %166 = arith.addf %158, %165 : vector<8x256xf32>
    %167 = vector.extract_strided_slice %1 {offsets = [0, 24], sizes = [8, 1], strides = [1, 1]} : vector<8x128xf32> to vector<8x1xf32>
    %168 = vector.broadcast %167 : vector<8x1xf32> to vector<8x256xf32>
    %169 = arith.mulf %168, %66 : vector<8x256xf32>
    %170 = arith.addf %162, %169 : vector<8x256xf32>
    %171 = vector.extract_strided_slice %1 {offsets = [0, 73], sizes = [8, 1], strides = [1, 1]} : vector<8x128xf32> to vector<8x1xf32>
    %172 = vector.broadcast %171 : vector<8x1xf32> to vector<8x256xf32>
    %173 = arith.mulf %172, %66 : vector<8x256xf32>
    %174 = arith.addf %166, %173 : vector<8x256xf32>
    %175 = vector.extract_strided_slice %1 {offsets = [0, 25], sizes = [8, 1], strides = [1, 1]} : vector<8x128xf32> to vector<8x1xf32>
    %176 = vector.broadcast %175 : vector<8x1xf32> to vector<8x256xf32>
    %177 = arith.mulf %176, %71 : vector<8x256xf32>
    %178 = arith.addf %170, %177 : vector<8x256xf32>
    %179 = vector.extract_strided_slice %1 {offsets = [0, 74], sizes = [8, 1], strides = [1, 1]} : vector<8x128xf32> to vector<8x1xf32>
    %180 = vector.broadcast %179 : vector<8x1xf32> to vector<8x256xf32>
    %181 = arith.mulf %180, %71 : vector<8x256xf32>
    %182 = arith.addf %174, %181 : vector<8x256xf32>
    %183 = vector.extract_strided_slice %1 {offsets = [0, 26], sizes = [8, 1], strides = [1, 1]} : vector<8x128xf32> to vector<8x1xf32>
    %184 = vector.broadcast %183 : vector<8x1xf32> to vector<8x256xf32>
    %185 = arith.mulf %184, %53 : vector<8x256xf32>
    %186 = arith.addf %178, %185 : vector<8x256xf32>
    %187 = vector.extract_strided_slice %1 {offsets = [0, 75], sizes = [8, 1], strides = [1, 1]} : vector<8x128xf32> to vector<8x1xf32>
    %188 = vector.broadcast %187 : vector<8x1xf32> to vector<8x256xf32>
    %189 = arith.mulf %188, %53 : vector<8x256xf32>
    %190 = arith.addf %182, %189 : vector<8x256xf32>
    %191 = vector.extract_strided_slice %1 {offsets = [0, 27], sizes = [8, 1], strides = [1, 1]} : vector<8x128xf32> to vector<8x1xf32>
    %192 = vector.broadcast %191 : vector<8x1xf32> to vector<8x256xf32>
    %193 = arith.mulf %192, %76 : vector<8x256xf32>
    %194 = arith.addf %186, %193 : vector<8x256xf32>
    %195 = vector.extract_strided_slice %1 {offsets = [0, 76], sizes = [8, 1], strides = [1, 1]} : vector<8x128xf32> to vector<8x1xf32>
    %196 = vector.broadcast %195 : vector<8x1xf32> to vector<8x256xf32>
    %197 = arith.mulf %196, %76 : vector<8x256xf32>
    %198 = arith.addf %190, %197 : vector<8x256xf32>
    %199 = vector.extract_strided_slice %1 {offsets = [0, 28], sizes = [8, 1], strides = [1, 1]} : vector<8x128xf32> to vector<8x1xf32>
    %200 = vector.broadcast %199 : vector<8x1xf32> to vector<8x256xf32>
    %201 = arith.mulf %200, %81 : vector<8x256xf32>
    %202 = arith.addf %194, %201 : vector<8x256xf32>
    %203 = vector.extract_strided_slice %1 {offsets = [0, 77], sizes = [8, 1], strides = [1, 1]} : vector<8x128xf32> to vector<8x1xf32>
    %204 = vector.broadcast %203 : vector<8x1xf32> to vector<8x256xf32>
    %205 = arith.mulf %204, %81 : vector<8x256xf32>
    %206 = arith.addf %198, %205 : vector<8x256xf32>
    %207 = vector.extract_strided_slice %1 {offsets = [0, 29], sizes = [8, 1], strides = [1, 1]} : vector<8x128xf32> to vector<8x1xf32>
    %208 = vector.broadcast %207 : vector<8x1xf32> to vector<8x256xf32>
    %209 = arith.mulf %208, %86 : vector<8x256xf32>
    %210 = arith.addf %202, %209 : vector<8x256xf32>
    %211 = vector.extract_strided_slice %1 {offsets = [0, 78], sizes = [8, 1], strides = [1, 1]} : vector<8x128xf32> to vector<8x1xf32>
    %212 = vector.broadcast %211 : vector<8x1xf32> to vector<8x256xf32>
    %213 = arith.mulf %212, %86 : vector<8x256xf32>
    %214 = arith.addf %206, %213 : vector<8x256xf32>
    %c32_i32 = arith.constant 32 : i32
    %215 = tpu.dynamic_rotate %210 by %c32_i32 dim 1 : vector<8x256xf32>, i32 -> vector<8x256xf32>
    %c32_i32_23 = arith.constant 32 : i32
    %216 = tpu.dynamic_rotate %214 by %c32_i32_23 dim 1 : vector<8x256xf32>, i32 -> vector<8x256xf32>
    %c32_i32_24 = arith.constant 32 : i32
    %217 = vector.broadcast %c32_i32_24 : i32 to vector<8x256xi32>
    %218 = arith.cmpi sge, %54, %217 : vector<8x256xi32>
    %cst_25 = arith.constant 0.000000e+00 : f32
    %219 = vector.broadcast %cst_25 : f32 to vector<8x256xf32>
    %220 = arith.select %218, %215, %219 : vector<8x256xi1>, vector<8x256xf32>
    %cst_26 = arith.constant 0.000000e+00 : f32
    %221 = vector.broadcast %cst_26 : f32 to vector<8x256xf32>
    %222 = arith.select %218, %216, %221 : vector<8x256xi1>, vector<8x256xf32>
    %223 = arith.addf %155, %220 : vector<8x256xf32>
    %224 = arith.addf %156, %222 : vector<8x256xf32>
    %cst_27 = arith.constant 0.000000e+00 : f32
    %225 = vector.broadcast %cst_27 : f32 to vector<8x256xf32>
    %cst_28 = arith.constant 0.000000e+00 : f32
    %226 = vector.broadcast %cst_28 : f32 to vector<8x256xf32>
    %227 = vector.extract_strided_slice %1 {offsets = [0, 30], sizes = [8, 1], strides = [1, 1]} : vector<8x128xf32> to vector<8x1xf32>
    %228 = vector.broadcast %227 : vector<8x1xf32> to vector<8x256xf32>
    %229 = arith.mulf %228, %61 : vector<8x256xf32>
    %230 = arith.addf %225, %229 : vector<8x256xf32>
    %231 = vector.extract_strided_slice %1 {offsets = [0, 79], sizes = [8, 1], strides = [1, 1]} : vector<8x128xf32> to vector<8x1xf32>
    %232 = vector.broadcast %231 : vector<8x1xf32> to vector<8x256xf32>
    %233 = arith.mulf %232, %61 : vector<8x256xf32>
    %234 = arith.addf %226, %233 : vector<8x256xf32>
    %235 = vector.extract_strided_slice %1 {offsets = [0, 31], sizes = [8, 1], strides = [1, 1]} : vector<8x128xf32> to vector<8x1xf32>
    %236 = vector.broadcast %235 : vector<8x1xf32> to vector<8x256xf32>
    %237 = arith.mulf %236, %66 : vector<8x256xf32>
    %238 = arith.addf %230, %237 : vector<8x256xf32>
    %239 = vector.extract_strided_slice %1 {offsets = [0, 80], sizes = [8, 1], strides = [1, 1]} : vector<8x128xf32> to vector<8x1xf32>
    %240 = vector.broadcast %239 : vector<8x1xf32> to vector<8x256xf32>
    %241 = arith.mulf %240, %66 : vector<8x256xf32>
    %242 = arith.addf %234, %241 : vector<8x256xf32>
    %243 = vector.extract_strided_slice %1 {offsets = [0, 32], sizes = [8, 1], strides = [1, 1]} : vector<8x128xf32> to vector<8x1xf32>
    %244 = vector.broadcast %243 : vector<8x1xf32> to vector<8x256xf32>
    %245 = arith.mulf %244, %71 : vector<8x256xf32>
    %246 = arith.addf %238, %245 : vector<8x256xf32>
    %247 = vector.extract_strided_slice %1 {offsets = [0, 81], sizes = [8, 1], strides = [1, 1]} : vector<8x128xf32> to vector<8x1xf32>
    %248 = vector.broadcast %247 : vector<8x1xf32> to vector<8x256xf32>
    %249 = arith.mulf %248, %71 : vector<8x256xf32>
    %250 = arith.addf %242, %249 : vector<8x256xf32>
    %251 = vector.extract_strided_slice %1 {offsets = [0, 33], sizes = [8, 1], strides = [1, 1]} : vector<8x128xf32> to vector<8x1xf32>
    %252 = vector.broadcast %251 : vector<8x1xf32> to vector<8x256xf32>
    %253 = arith.mulf %252, %53 : vector<8x256xf32>
    %254 = arith.addf %246, %253 : vector<8x256xf32>
    %255 = vector.extract_strided_slice %1 {offsets = [0, 82], sizes = [8, 1], strides = [1, 1]} : vector<8x128xf32> to vector<8x1xf32>
    %256 = vector.broadcast %255 : vector<8x1xf32> to vector<8x256xf32>
    %257 = arith.mulf %256, %53 : vector<8x256xf32>
    %258 = arith.addf %250, %257 : vector<8x256xf32>
    %259 = vector.extract_strided_slice %1 {offsets = [0, 34], sizes = [8, 1], strides = [1, 1]} : vector<8x128xf32> to vector<8x1xf32>
    %260 = vector.broadcast %259 : vector<8x1xf32> to vector<8x256xf32>
    %261 = arith.mulf %260, %76 : vector<8x256xf32>
    %262 = arith.addf %254, %261 : vector<8x256xf32>
    %263 = vector.extract_strided_slice %1 {offsets = [0, 83], sizes = [8, 1], strides = [1, 1]} : vector<8x128xf32> to vector<8x1xf32>
    %264 = vector.broadcast %263 : vector<8x1xf32> to vector<8x256xf32>
    %265 = arith.mulf %264, %76 : vector<8x256xf32>
    %266 = arith.addf %258, %265 : vector<8x256xf32>
    %267 = vector.extract_strided_slice %1 {offsets = [0, 35], sizes = [8, 1], strides = [1, 1]} : vector<8x128xf32> to vector<8x1xf32>
    %268 = vector.broadcast %267 : vector<8x1xf32> to vector<8x256xf32>
    %269 = arith.mulf %268, %81 : vector<8x256xf32>
    %270 = arith.addf %262, %269 : vector<8x256xf32>
    %271 = vector.extract_strided_slice %1 {offsets = [0, 84], sizes = [8, 1], strides = [1, 1]} : vector<8x128xf32> to vector<8x1xf32>
    %272 = vector.broadcast %271 : vector<8x1xf32> to vector<8x256xf32>
    %273 = arith.mulf %272, %81 : vector<8x256xf32>
    %274 = arith.addf %266, %273 : vector<8x256xf32>
    %275 = vector.extract_strided_slice %1 {offsets = [0, 36], sizes = [8, 1], strides = [1, 1]} : vector<8x128xf32> to vector<8x1xf32>
    %276 = vector.broadcast %275 : vector<8x1xf32> to vector<8x256xf32>
    %277 = arith.mulf %276, %86 : vector<8x256xf32>
    %278 = arith.addf %270, %277 : vector<8x256xf32>
    %279 = vector.extract_strided_slice %1 {offsets = [0, 85], sizes = [8, 1], strides = [1, 1]} : vector<8x128xf32> to vector<8x1xf32>
    %280 = vector.broadcast %279 : vector<8x1xf32> to vector<8x256xf32>
    %281 = arith.mulf %280, %86 : vector<8x256xf32>
    %282 = arith.addf %274, %281 : vector<8x256xf32>
    %c16_i32 = arith.constant 16 : i32
    %283 = tpu.dynamic_rotate %278 by %c16_i32 dim 1 : vector<8x256xf32>, i32 -> vector<8x256xf32>
    %c16_i32_29 = arith.constant 16 : i32
    %284 = tpu.dynamic_rotate %282 by %c16_i32_29 dim 1 : vector<8x256xf32>, i32 -> vector<8x256xf32>
    %c16_i32_30 = arith.constant 16 : i32
    %285 = vector.broadcast %c16_i32_30 : i32 to vector<8x256xi32>
    %286 = arith.cmpi sge, %54, %285 : vector<8x256xi32>
    %cst_31 = arith.constant 0.000000e+00 : f32
    %287 = vector.broadcast %cst_31 : f32 to vector<8x256xf32>
    %288 = arith.select %286, %283, %287 : vector<8x256xi1>, vector<8x256xf32>
    %cst_32 = arith.constant 0.000000e+00 : f32
    %289 = vector.broadcast %cst_32 : f32 to vector<8x256xf32>
    %290 = arith.select %286, %284, %289 : vector<8x256xi1>, vector<8x256xf32>
    %291 = arith.addf %223, %288 : vector<8x256xf32>
    %292 = arith.addf %224, %290 : vector<8x256xf32>
    %cst_33 = arith.constant 0.000000e+00 : f32
    %293 = vector.broadcast %cst_33 : f32 to vector<8x256xf32>
    %cst_34 = arith.constant 0.000000e+00 : f32
    %294 = vector.broadcast %cst_34 : f32 to vector<8x256xf32>
    %295 = vector.extract_strided_slice %1 {offsets = [0, 37], sizes = [8, 1], strides = [1, 1]} : vector<8x128xf32> to vector<8x1xf32>
    %296 = vector.broadcast %295 : vector<8x1xf32> to vector<8x256xf32>
    %297 = arith.mulf %296, %61 : vector<8x256xf32>
    %298 = arith.addf %293, %297 : vector<8x256xf32>
    %299 = vector.extract_strided_slice %1 {offsets = [0, 86], sizes = [8, 1], strides = [1, 1]} : vector<8x128xf32> to vector<8x1xf32>
    %300 = vector.broadcast %299 : vector<8x1xf32> to vector<8x256xf32>
    %301 = arith.mulf %300, %61 : vector<8x256xf32>
    %302 = arith.addf %294, %301 : vector<8x256xf32>
    %303 = vector.extract_strided_slice %1 {offsets = [0, 38], sizes = [8, 1], strides = [1, 1]} : vector<8x128xf32> to vector<8x1xf32>
    %304 = vector.broadcast %303 : vector<8x1xf32> to vector<8x256xf32>
    %305 = arith.mulf %304, %66 : vector<8x256xf32>
    %306 = arith.addf %298, %305 : vector<8x256xf32>
    %307 = vector.extract_strided_slice %1 {offsets = [0, 87], sizes = [8, 1], strides = [1, 1]} : vector<8x128xf32> to vector<8x1xf32>
    %308 = vector.broadcast %307 : vector<8x1xf32> to vector<8x256xf32>
    %309 = arith.mulf %308, %66 : vector<8x256xf32>
    %310 = arith.addf %302, %309 : vector<8x256xf32>
    %311 = vector.extract_strided_slice %1 {offsets = [0, 39], sizes = [8, 1], strides = [1, 1]} : vector<8x128xf32> to vector<8x1xf32>
    %312 = vector.broadcast %311 : vector<8x1xf32> to vector<8x256xf32>
    %313 = arith.mulf %312, %71 : vector<8x256xf32>
    %314 = arith.addf %306, %313 : vector<8x256xf32>
    %315 = vector.extract_strided_slice %1 {offsets = [0, 88], sizes = [8, 1], strides = [1, 1]} : vector<8x128xf32> to vector<8x1xf32>
    %316 = vector.broadcast %315 : vector<8x1xf32> to vector<8x256xf32>
    %317 = arith.mulf %316, %71 : vector<8x256xf32>
    %318 = arith.addf %310, %317 : vector<8x256xf32>
    %319 = vector.extract_strided_slice %1 {offsets = [0, 40], sizes = [8, 1], strides = [1, 1]} : vector<8x128xf32> to vector<8x1xf32>
    %320 = vector.broadcast %319 : vector<8x1xf32> to vector<8x256xf32>
    %321 = arith.mulf %320, %53 : vector<8x256xf32>
    %322 = arith.addf %314, %321 : vector<8x256xf32>
    %323 = vector.extract_strided_slice %1 {offsets = [0, 89], sizes = [8, 1], strides = [1, 1]} : vector<8x128xf32> to vector<8x1xf32>
    %324 = vector.broadcast %323 : vector<8x1xf32> to vector<8x256xf32>
    %325 = arith.mulf %324, %53 : vector<8x256xf32>
    %326 = arith.addf %318, %325 : vector<8x256xf32>
    %327 = vector.extract_strided_slice %1 {offsets = [0, 41], sizes = [8, 1], strides = [1, 1]} : vector<8x128xf32> to vector<8x1xf32>
    %328 = vector.broadcast %327 : vector<8x1xf32> to vector<8x256xf32>
    %329 = arith.mulf %328, %76 : vector<8x256xf32>
    %330 = arith.addf %322, %329 : vector<8x256xf32>
    %331 = vector.extract_strided_slice %1 {offsets = [0, 90], sizes = [8, 1], strides = [1, 1]} : vector<8x128xf32> to vector<8x1xf32>
    %332 = vector.broadcast %331 : vector<8x1xf32> to vector<8x256xf32>
    %333 = arith.mulf %332, %76 : vector<8x256xf32>
    %334 = arith.addf %326, %333 : vector<8x256xf32>
    %335 = vector.extract_strided_slice %1 {offsets = [0, 42], sizes = [8, 1], strides = [1, 1]} : vector<8x128xf32> to vector<8x1xf32>
    %336 = vector.broadcast %335 : vector<8x1xf32> to vector<8x256xf32>
    %337 = arith.mulf %336, %81 : vector<8x256xf32>
    %338 = arith.addf %330, %337 : vector<8x256xf32>
    %339 = vector.extract_strided_slice %1 {offsets = [0, 91], sizes = [8, 1], strides = [1, 1]} : vector<8x128xf32> to vector<8x1xf32>
    %340 = vector.broadcast %339 : vector<8x1xf32> to vector<8x256xf32>
    %341 = arith.mulf %340, %81 : vector<8x256xf32>
    %342 = arith.addf %334, %341 : vector<8x256xf32>
    %343 = vector.extract_strided_slice %1 {offsets = [0, 43], sizes = [8, 1], strides = [1, 1]} : vector<8x128xf32> to vector<8x1xf32>
    %344 = vector.broadcast %343 : vector<8x1xf32> to vector<8x256xf32>
    %345 = arith.mulf %344, %86 : vector<8x256xf32>
    %346 = arith.addf %338, %345 : vector<8x256xf32>
    %347 = vector.extract_strided_slice %1 {offsets = [0, 92], sizes = [8, 1], strides = [1, 1]} : vector<8x128xf32> to vector<8x1xf32>
    %348 = vector.broadcast %347 : vector<8x1xf32> to vector<8x256xf32>
    %349 = arith.mulf %348, %86 : vector<8x256xf32>
    %350 = arith.addf %342, %349 : vector<8x256xf32>
    %351 = arith.addf %291, %346 : vector<8x256xf32>
    %352 = arith.addf %292, %350 : vector<8x256xf32>
    %cst_35 = arith.constant 0.000000e+00 : f32
    %353 = vector.broadcast %cst_35 : f32 to vector<8x256xf32>
    %cst_36 = arith.constant 0.000000e+00 : f32
    %354 = vector.broadcast %cst_36 : f32 to vector<8x256xf32>
    %355 = vector.extract_strided_slice %1 {offsets = [0, 44], sizes = [8, 1], strides = [1, 1]} : vector<8x128xf32> to vector<8x1xf32>
    %356 = vector.broadcast %355 : vector<8x1xf32> to vector<8x256xf32>
    %357 = arith.mulf %356, %61 : vector<8x256xf32>
    %358 = arith.addf %353, %357 : vector<8x256xf32>
    %359 = vector.extract_strided_slice %1 {offsets = [0, 93], sizes = [8, 1], strides = [1, 1]} : vector<8x128xf32> to vector<8x1xf32>
    %360 = vector.broadcast %359 : vector<8x1xf32> to vector<8x256xf32>
    %361 = arith.mulf %360, %61 : vector<8x256xf32>
    %362 = arith.addf %354, %361 : vector<8x256xf32>
    %363 = vector.extract_strided_slice %1 {offsets = [0, 45], sizes = [8, 1], strides = [1, 1]} : vector<8x128xf32> to vector<8x1xf32>
    %364 = vector.broadcast %363 : vector<8x1xf32> to vector<8x256xf32>
    %365 = arith.mulf %364, %66 : vector<8x256xf32>
    %366 = arith.addf %358, %365 : vector<8x256xf32>
    %367 = vector.extract_strided_slice %1 {offsets = [0, 94], sizes = [8, 1], strides = [1, 1]} : vector<8x128xf32> to vector<8x1xf32>
    %368 = vector.broadcast %367 : vector<8x1xf32> to vector<8x256xf32>
    %369 = arith.mulf %368, %66 : vector<8x256xf32>
    %370 = arith.addf %362, %369 : vector<8x256xf32>
    %371 = vector.extract_strided_slice %1 {offsets = [0, 46], sizes = [8, 1], strides = [1, 1]} : vector<8x128xf32> to vector<8x1xf32>
    %372 = vector.broadcast %371 : vector<8x1xf32> to vector<8x256xf32>
    %373 = arith.mulf %372, %71 : vector<8x256xf32>
    %374 = arith.addf %366, %373 : vector<8x256xf32>
    %375 = vector.extract_strided_slice %1 {offsets = [0, 95], sizes = [8, 1], strides = [1, 1]} : vector<8x128xf32> to vector<8x1xf32>
    %376 = vector.broadcast %375 : vector<8x1xf32> to vector<8x256xf32>
    %377 = arith.mulf %376, %71 : vector<8x256xf32>
    %378 = arith.addf %370, %377 : vector<8x256xf32>
    %379 = vector.extract_strided_slice %1 {offsets = [0, 47], sizes = [8, 1], strides = [1, 1]} : vector<8x128xf32> to vector<8x1xf32>
    %380 = vector.broadcast %379 : vector<8x1xf32> to vector<8x256xf32>
    %381 = arith.mulf %380, %53 : vector<8x256xf32>
    %382 = arith.addf %374, %381 : vector<8x256xf32>
    %383 = vector.extract_strided_slice %1 {offsets = [0, 96], sizes = [8, 1], strides = [1, 1]} : vector<8x128xf32> to vector<8x1xf32>
    %384 = vector.broadcast %383 : vector<8x1xf32> to vector<8x256xf32>
    %385 = arith.mulf %384, %53 : vector<8x256xf32>
    %386 = arith.addf %378, %385 : vector<8x256xf32>
    %387 = vector.extract_strided_slice %1 {offsets = [0, 48], sizes = [8, 1], strides = [1, 1]} : vector<8x128xf32> to vector<8x1xf32>
    %388 = vector.broadcast %387 : vector<8x1xf32> to vector<8x256xf32>
    %389 = arith.mulf %388, %76 : vector<8x256xf32>
    %390 = arith.addf %382, %389 : vector<8x256xf32>
    %391 = vector.extract_strided_slice %1 {offsets = [0, 97], sizes = [8, 1], strides = [1, 1]} : vector<8x128xf32> to vector<8x1xf32>
    %392 = vector.broadcast %391 : vector<8x1xf32> to vector<8x256xf32>
    %393 = arith.mulf %392, %76 : vector<8x256xf32>
    %394 = arith.addf %386, %393 : vector<8x256xf32>
    %395 = vector.extract_strided_slice %1 {offsets = [0, 49], sizes = [8, 1], strides = [1, 1]} : vector<8x128xf32> to vector<8x1xf32>
    %396 = vector.broadcast %395 : vector<8x1xf32> to vector<8x256xf32>
    %397 = arith.mulf %396, %81 : vector<8x256xf32>
    %398 = arith.addf %390, %397 : vector<8x256xf32>
    %399 = vector.extract_strided_slice %1 {offsets = [0, 98], sizes = [8, 1], strides = [1, 1]} : vector<8x128xf32> to vector<8x1xf32>
    %400 = vector.broadcast %399 : vector<8x1xf32> to vector<8x256xf32>
    %401 = arith.mulf %400, %81 : vector<8x256xf32>
    %402 = arith.addf %394, %401 : vector<8x256xf32>
    %403 = vector.extract_strided_slice %1 {offsets = [0, 50], sizes = [8, 1], strides = [1, 1]} : vector<8x128xf32> to vector<8x1xf32>
    %404 = vector.broadcast %403 : vector<8x1xf32> to vector<8x256xf32>
    %405 = arith.mulf %404, %86 : vector<8x256xf32>
    %406 = arith.addf %398, %405 : vector<8x256xf32>
    %407 = vector.extract_strided_slice %1 {offsets = [0, 99], sizes = [8, 1], strides = [1, 1]} : vector<8x128xf32> to vector<8x1xf32>
    %408 = vector.broadcast %407 : vector<8x1xf32> to vector<8x256xf32>
    %409 = arith.mulf %408, %86 : vector<8x256xf32>
    %410 = arith.addf %402, %409 : vector<8x256xf32>
    %c240_i32 = arith.constant 240 : i32
    %411 = tpu.dynamic_rotate %406 by %c240_i32 dim 1 : vector<8x256xf32>, i32 -> vector<8x256xf32>
    %c240_i32_37 = arith.constant 240 : i32
    %412 = tpu.dynamic_rotate %410 by %c240_i32_37 dim 1 : vector<8x256xf32>, i32 -> vector<8x256xf32>
    %c240_i32_38 = arith.constant 240 : i32
    %413 = vector.broadcast %c240_i32_38 : i32 to vector<8x256xi32>
    %414 = arith.cmpi slt, %54, %413 : vector<8x256xi32>
    %cst_39 = arith.constant 0.000000e+00 : f32
    %415 = vector.broadcast %cst_39 : f32 to vector<8x256xf32>
    %416 = arith.select %414, %411, %415 : vector<8x256xi1>, vector<8x256xf32>
    %cst_40 = arith.constant 0.000000e+00 : f32
    %417 = vector.broadcast %cst_40 : f32 to vector<8x256xf32>
    %418 = arith.select %414, %412, %417 : vector<8x256xi1>, vector<8x256xf32>
    %419 = arith.addf %351, %416 : vector<8x256xf32>
    %420 = arith.addf %352, %418 : vector<8x256xf32>
    %cst_41 = arith.constant 0.000000e+00 : f32
    %421 = vector.broadcast %cst_41 : f32 to vector<8x256xf32>
    %cst_42 = arith.constant 0.000000e+00 : f32
    %422 = vector.broadcast %cst_42 : f32 to vector<8x256xf32>
    %423 = vector.extract_strided_slice %1 {offsets = [0, 51], sizes = [8, 1], strides = [1, 1]} : vector<8x128xf32> to vector<8x1xf32>
    %424 = vector.broadcast %423 : vector<8x1xf32> to vector<8x256xf32>
    %425 = arith.mulf %424, %61 : vector<8x256xf32>
    %426 = arith.addf %421, %425 : vector<8x256xf32>
    %427 = vector.extract_strided_slice %1 {offsets = [0, 100], sizes = [8, 1], strides = [1, 1]} : vector<8x128xf32> to vector<8x1xf32>
    %428 = vector.broadcast %427 : vector<8x1xf32> to vector<8x256xf32>
    %429 = arith.mulf %428, %61 : vector<8x256xf32>
    %430 = arith.addf %422, %429 : vector<8x256xf32>
    %431 = vector.extract_strided_slice %1 {offsets = [0, 52], sizes = [8, 1], strides = [1, 1]} : vector<8x128xf32> to vector<8x1xf32>
    %432 = vector.broadcast %431 : vector<8x1xf32> to vector<8x256xf32>
    %433 = arith.mulf %432, %66 : vector<8x256xf32>
    %434 = arith.addf %426, %433 : vector<8x256xf32>
    %435 = vector.extract_strided_slice %1 {offsets = [0, 101], sizes = [8, 1], strides = [1, 1]} : vector<8x128xf32> to vector<8x1xf32>
    %436 = vector.broadcast %435 : vector<8x1xf32> to vector<8x256xf32>
    %437 = arith.mulf %436, %66 : vector<8x256xf32>
    %438 = arith.addf %430, %437 : vector<8x256xf32>
    %439 = vector.extract_strided_slice %1 {offsets = [0, 53], sizes = [8, 1], strides = [1, 1]} : vector<8x128xf32> to vector<8x1xf32>
    %440 = vector.broadcast %439 : vector<8x1xf32> to vector<8x256xf32>
    %441 = arith.mulf %440, %71 : vector<8x256xf32>
    %442 = arith.addf %434, %441 : vector<8x256xf32>
    %443 = vector.extract_strided_slice %1 {offsets = [0, 102], sizes = [8, 1], strides = [1, 1]} : vector<8x128xf32> to vector<8x1xf32>
    %444 = vector.broadcast %443 : vector<8x1xf32> to vector<8x256xf32>
    %445 = arith.mulf %444, %71 : vector<8x256xf32>
    %446 = arith.addf %438, %445 : vector<8x256xf32>
    %447 = vector.extract_strided_slice %1 {offsets = [0, 54], sizes = [8, 1], strides = [1, 1]} : vector<8x128xf32> to vector<8x1xf32>
    %448 = vector.broadcast %447 : vector<8x1xf32> to vector<8x256xf32>
    %449 = arith.mulf %448, %53 : vector<8x256xf32>
    %450 = arith.addf %442, %449 : vector<8x256xf32>
    %451 = vector.extract_strided_slice %1 {offsets = [0, 103], sizes = [8, 1], strides = [1, 1]} : vector<8x128xf32> to vector<8x1xf32>
    %452 = vector.broadcast %451 : vector<8x1xf32> to vector<8x256xf32>
    %453 = arith.mulf %452, %53 : vector<8x256xf32>
    %454 = arith.addf %446, %453 : vector<8x256xf32>
    %455 = vector.extract_strided_slice %1 {offsets = [0, 55], sizes = [8, 1], strides = [1, 1]} : vector<8x128xf32> to vector<8x1xf32>
    %456 = vector.broadcast %455 : vector<8x1xf32> to vector<8x256xf32>
    %457 = arith.mulf %456, %76 : vector<8x256xf32>
    %458 = arith.addf %450, %457 : vector<8x256xf32>
    %459 = vector.extract_strided_slice %1 {offsets = [0, 104], sizes = [8, 1], strides = [1, 1]} : vector<8x128xf32> to vector<8x1xf32>
    %460 = vector.broadcast %459 : vector<8x1xf32> to vector<8x256xf32>
    %461 = arith.mulf %460, %76 : vector<8x256xf32>
    %462 = arith.addf %454, %461 : vector<8x256xf32>
    %463 = vector.extract_strided_slice %1 {offsets = [0, 56], sizes = [8, 1], strides = [1, 1]} : vector<8x128xf32> to vector<8x1xf32>
    %464 = vector.broadcast %463 : vector<8x1xf32> to vector<8x256xf32>
    %465 = arith.mulf %464, %81 : vector<8x256xf32>
    %466 = arith.addf %458, %465 : vector<8x256xf32>
    %467 = vector.extract_strided_slice %1 {offsets = [0, 105], sizes = [8, 1], strides = [1, 1]} : vector<8x128xf32> to vector<8x1xf32>
    %468 = vector.broadcast %467 : vector<8x1xf32> to vector<8x256xf32>
    %469 = arith.mulf %468, %81 : vector<8x256xf32>
    %470 = arith.addf %462, %469 : vector<8x256xf32>
    %471 = vector.extract_strided_slice %1 {offsets = [0, 57], sizes = [8, 1], strides = [1, 1]} : vector<8x128xf32> to vector<8x1xf32>
    %472 = vector.broadcast %471 : vector<8x1xf32> to vector<8x256xf32>
    %473 = arith.mulf %472, %86 : vector<8x256xf32>
    %474 = arith.addf %466, %473 : vector<8x256xf32>
    %475 = vector.extract_strided_slice %1 {offsets = [0, 106], sizes = [8, 1], strides = [1, 1]} : vector<8x128xf32> to vector<8x1xf32>
    %476 = vector.broadcast %475 : vector<8x1xf32> to vector<8x256xf32>
    %477 = arith.mulf %476, %86 : vector<8x256xf32>
    %478 = arith.addf %470, %477 : vector<8x256xf32>
    %c224_i32 = arith.constant 224 : i32
    %479 = tpu.dynamic_rotate %474 by %c224_i32 dim 1 : vector<8x256xf32>, i32 -> vector<8x256xf32>
    %c224_i32_43 = arith.constant 224 : i32
    %480 = tpu.dynamic_rotate %478 by %c224_i32_43 dim 1 : vector<8x256xf32>, i32 -> vector<8x256xf32>
    %c224_i32_44 = arith.constant 224 : i32
    %481 = vector.broadcast %c224_i32_44 : i32 to vector<8x256xi32>
    %482 = arith.cmpi slt, %54, %481 : vector<8x256xi32>
    %cst_45 = arith.constant 0.000000e+00 : f32
    %483 = vector.broadcast %cst_45 : f32 to vector<8x256xf32>
    %484 = arith.select %482, %479, %483 : vector<8x256xi1>, vector<8x256xf32>
    %cst_46 = arith.constant 0.000000e+00 : f32
    %485 = vector.broadcast %cst_46 : f32 to vector<8x256xf32>
    %486 = arith.select %482, %480, %485 : vector<8x256xi1>, vector<8x256xf32>
    %487 = arith.addf %419, %484 : vector<8x256xf32>
    %488 = arith.addf %420, %486 : vector<8x256xf32>
    %cst_47 = arith.constant 0.000000e+00 : f32
    %489 = vector.broadcast %cst_47 : f32 to vector<8x256xf32>
    %cst_48 = arith.constant 0.000000e+00 : f32
    %490 = vector.broadcast %cst_48 : f32 to vector<8x256xf32>
    %491 = vector.extract_strided_slice %1 {offsets = [0, 58], sizes = [8, 1], strides = [1, 1]} : vector<8x128xf32> to vector<8x1xf32>
    %492 = vector.broadcast %491 : vector<8x1xf32> to vector<8x256xf32>
    %493 = arith.mulf %492, %61 : vector<8x256xf32>
    %494 = arith.addf %489, %493 : vector<8x256xf32>
    %495 = vector.extract_strided_slice %1 {offsets = [0, 107], sizes = [8, 1], strides = [1, 1]} : vector<8x128xf32> to vector<8x1xf32>
    %496 = vector.broadcast %495 : vector<8x1xf32> to vector<8x256xf32>
    %497 = arith.mulf %496, %61 : vector<8x256xf32>
    %498 = arith.addf %490, %497 : vector<8x256xf32>
    %499 = vector.extract_strided_slice %1 {offsets = [0, 59], sizes = [8, 1], strides = [1, 1]} : vector<8x128xf32> to vector<8x1xf32>
    %500 = vector.broadcast %499 : vector<8x1xf32> to vector<8x256xf32>
    %501 = arith.mulf %500, %66 : vector<8x256xf32>
    %502 = arith.addf %494, %501 : vector<8x256xf32>
    %503 = vector.extract_strided_slice %1 {offsets = [0, 108], sizes = [8, 1], strides = [1, 1]} : vector<8x128xf32> to vector<8x1xf32>
    %504 = vector.broadcast %503 : vector<8x1xf32> to vector<8x256xf32>
    %505 = arith.mulf %504, %66 : vector<8x256xf32>
    %506 = arith.addf %498, %505 : vector<8x256xf32>
    %507 = vector.extract_strided_slice %1 {offsets = [0, 60], sizes = [8, 1], strides = [1, 1]} : vector<8x128xf32> to vector<8x1xf32>
    %508 = vector.broadcast %507 : vector<8x1xf32> to vector<8x256xf32>
    %509 = arith.mulf %508, %71 : vector<8x256xf32>
    %510 = arith.addf %502, %509 : vector<8x256xf32>
    %511 = vector.extract_strided_slice %1 {offsets = [0, 109], sizes = [8, 1], strides = [1, 1]} : vector<8x128xf32> to vector<8x1xf32>
    %512 = vector.broadcast %511 : vector<8x1xf32> to vector<8x256xf32>
    %513 = arith.mulf %512, %71 : vector<8x256xf32>
    %514 = arith.addf %506, %513 : vector<8x256xf32>
    %515 = vector.extract_strided_slice %1 {offsets = [0, 61], sizes = [8, 1], strides = [1, 1]} : vector<8x128xf32> to vector<8x1xf32>
    %516 = vector.broadcast %515 : vector<8x1xf32> to vector<8x256xf32>
    %517 = arith.mulf %516, %53 : vector<8x256xf32>
    %518 = arith.addf %510, %517 : vector<8x256xf32>
    %519 = vector.extract_strided_slice %1 {offsets = [0, 110], sizes = [8, 1], strides = [1, 1]} : vector<8x128xf32> to vector<8x1xf32>
    %520 = vector.broadcast %519 : vector<8x1xf32> to vector<8x256xf32>
    %521 = arith.mulf %520, %53 : vector<8x256xf32>
    %522 = arith.addf %514, %521 : vector<8x256xf32>
    %523 = vector.extract_strided_slice %1 {offsets = [0, 62], sizes = [8, 1], strides = [1, 1]} : vector<8x128xf32> to vector<8x1xf32>
    %524 = vector.broadcast %523 : vector<8x1xf32> to vector<8x256xf32>
    %525 = arith.mulf %524, %76 : vector<8x256xf32>
    %526 = arith.addf %518, %525 : vector<8x256xf32>
    %527 = vector.extract_strided_slice %1 {offsets = [0, 111], sizes = [8, 1], strides = [1, 1]} : vector<8x128xf32> to vector<8x1xf32>
    %528 = vector.broadcast %527 : vector<8x1xf32> to vector<8x256xf32>
    %529 = arith.mulf %528, %76 : vector<8x256xf32>
    %530 = arith.addf %522, %529 : vector<8x256xf32>
    %531 = vector.extract_strided_slice %1 {offsets = [0, 63], sizes = [8, 1], strides = [1, 1]} : vector<8x128xf32> to vector<8x1xf32>
    %532 = vector.broadcast %531 : vector<8x1xf32> to vector<8x256xf32>
    %533 = arith.mulf %532, %81 : vector<8x256xf32>
    %534 = arith.addf %526, %533 : vector<8x256xf32>
    %535 = vector.extract_strided_slice %1 {offsets = [0, 112], sizes = [8, 1], strides = [1, 1]} : vector<8x128xf32> to vector<8x1xf32>
    %536 = vector.broadcast %535 : vector<8x1xf32> to vector<8x256xf32>
    %537 = arith.mulf %536, %81 : vector<8x256xf32>
    %538 = arith.addf %530, %537 : vector<8x256xf32>
    %539 = vector.extract_strided_slice %1 {offsets = [0, 64], sizes = [8, 1], strides = [1, 1]} : vector<8x128xf32> to vector<8x1xf32>
    %540 = vector.broadcast %539 : vector<8x1xf32> to vector<8x256xf32>
    %541 = arith.mulf %540, %86 : vector<8x256xf32>
    %542 = arith.addf %534, %541 : vector<8x256xf32>
    %543 = vector.extract_strided_slice %1 {offsets = [0, 113], sizes = [8, 1], strides = [1, 1]} : vector<8x128xf32> to vector<8x1xf32>
    %544 = vector.broadcast %543 : vector<8x1xf32> to vector<8x256xf32>
    %545 = arith.mulf %544, %86 : vector<8x256xf32>
    %546 = arith.addf %538, %545 : vector<8x256xf32>
    %c208_i32 = arith.constant 208 : i32
    %547 = tpu.dynamic_rotate %542 by %c208_i32 dim 1 : vector<8x256xf32>, i32 -> vector<8x256xf32>
    %c208_i32_49 = arith.constant 208 : i32
    %548 = tpu.dynamic_rotate %546 by %c208_i32_49 dim 1 : vector<8x256xf32>, i32 -> vector<8x256xf32>
    %c208_i32_50 = arith.constant 208 : i32
    %549 = vector.broadcast %c208_i32_50 : i32 to vector<8x256xi32>
    %550 = arith.cmpi slt, %54, %549 : vector<8x256xi32>
    %cst_51 = arith.constant 0.000000e+00 : f32
    %551 = vector.broadcast %cst_51 : f32 to vector<8x256xf32>
    %552 = arith.select %550, %547, %551 : vector<8x256xi1>, vector<8x256xf32>
    %cst_52 = arith.constant 0.000000e+00 : f32
    %553 = vector.broadcast %cst_52 : f32 to vector<8x256xf32>
    %554 = arith.select %550, %548, %553 : vector<8x256xi1>, vector<8x256xf32>
    %555 = arith.addf %487, %552 : vector<8x256xf32>
    %556 = arith.addf %488, %554 : vector<8x256xf32>
    %557 = vector.extract_strided_slice %1 {offsets = [0, 115], sizes = [8, 1], strides = [1, 1]} : vector<8x128xf32> to vector<8x1xf32>
    %558 = vector.broadcast %557 : vector<8x1xf32> to vector<8x256xf32>
    %559 = arith.addf %555, %558 : vector<8x256xf32>
    %560 = vector.extract_strided_slice %1 {offsets = [0, 116], sizes = [8, 1], strides = [1, 1]} : vector<8x128xf32> to vector<8x1xf32>
    %561 = vector.broadcast %560 : vector<8x1xf32> to vector<8x256xf32>
    %562 = arith.addf %556, %561 : vector<8x256xf32>
    %cst_53 = arith.constant 5.000000e-01 : f32
    %563 = vector.broadcast %cst_53 : f32 to vector<8x256xf32>
    %564 = arith.mulf %563, %559 : vector<8x256xf32>
    %cst_54 = arith.constant 0.707106769 : f32
    %565 = vector.broadcast %cst_54 : f32 to vector<8x256xf32>
    %566 = arith.mulf %559, %565 : vector<8x256xf32>
    %567 = math.erf %566 : vector<8x256xf32>
    %cst_55 = arith.constant 1.000000e+00 : f32
    %568 = vector.broadcast %cst_55 : f32 to vector<8x256xf32>
    %569 = arith.addf %568, %567 : vector<8x256xf32>
    %570 = arith.mulf %564, %569 : vector<8x256xf32>
    %571 = arith.negf %562 : vector<8x256xf32>
    %572 = math.exp %571 : vector<8x256xf32>
    %cst_56 = arith.constant 1.000000e+00 : f32
    %573 = vector.broadcast %cst_56 : f32 to vector<8x256xf32>
    %574 = arith.addf %573, %572 : vector<8x256xf32>
    %575 = arith.divf %573, %574 : vector<8x256xf32>
    %576 = arith.mulf %570, %575 : vector<8x256xf32>
    %cst_57 = arith.constant 0.000000e+00 : f32
    %577 = vector.broadcast %cst_57 : f32 to vector<8x256xf32>
    %578 = vector.extract_strided_slice %1 {offsets = [0, 8], sizes = [8, 1], strides = [1, 1]} : vector<8x128xf32> to vector<8x1xf32>
    %579 = vector.extract_strided_slice %576 {offsets = [0, 0], sizes = [1, 256], strides = [1, 1]} : vector<8x256xf32> to vector<1x256xf32>
    %580 = vector.broadcast %578 : vector<8x1xf32> to vector<8x256xf32>
    %581 = vector.broadcast %579 : vector<1x256xf32> to vector<8x256xf32>
    %582 = arith.mulf %580, %581 : vector<8x256xf32>
    %583 = arith.addf %577, %582 : vector<8x256xf32>
    %584 = vector.extract_strided_slice %1 {offsets = [0, 9], sizes = [8, 1], strides = [1, 1]} : vector<8x128xf32> to vector<8x1xf32>
    %585 = vector.extract_strided_slice %576 {offsets = [1, 0], sizes = [1, 256], strides = [1, 1]} : vector<8x256xf32> to vector<1x256xf32>
    %586 = vector.broadcast %584 : vector<8x1xf32> to vector<8x256xf32>
    %587 = vector.broadcast %585 : vector<1x256xf32> to vector<8x256xf32>
    %588 = arith.mulf %586, %587 : vector<8x256xf32>
    %589 = arith.addf %583, %588 : vector<8x256xf32>
    %590 = vector.extract_strided_slice %1 {offsets = [0, 10], sizes = [8, 1], strides = [1, 1]} : vector<8x128xf32> to vector<8x1xf32>
    %591 = vector.extract_strided_slice %576 {offsets = [2, 0], sizes = [1, 256], strides = [1, 1]} : vector<8x256xf32> to vector<1x256xf32>
    %592 = vector.broadcast %590 : vector<8x1xf32> to vector<8x256xf32>
    %593 = vector.broadcast %591 : vector<1x256xf32> to vector<8x256xf32>
    %594 = arith.mulf %592, %593 : vector<8x256xf32>
    %595 = arith.addf %589, %594 : vector<8x256xf32>
    %596 = vector.extract_strided_slice %1 {offsets = [0, 11], sizes = [8, 1], strides = [1, 1]} : vector<8x128xf32> to vector<8x1xf32>
    %597 = vector.extract_strided_slice %576 {offsets = [3, 0], sizes = [1, 256], strides = [1, 1]} : vector<8x256xf32> to vector<1x256xf32>
    %598 = vector.broadcast %596 : vector<8x1xf32> to vector<8x256xf32>
    %599 = vector.broadcast %597 : vector<1x256xf32> to vector<8x256xf32>
    %600 = arith.mulf %598, %599 : vector<8x256xf32>
    %601 = arith.addf %595, %600 : vector<8x256xf32>
    %602 = vector.extract_strided_slice %1 {offsets = [0, 12], sizes = [8, 1], strides = [1, 1]} : vector<8x128xf32> to vector<8x1xf32>
    %603 = vector.extract_strided_slice %576 {offsets = [4, 0], sizes = [1, 256], strides = [1, 1]} : vector<8x256xf32> to vector<1x256xf32>
    %604 = vector.broadcast %602 : vector<8x1xf32> to vector<8x256xf32>
    %605 = vector.broadcast %603 : vector<1x256xf32> to vector<8x256xf32>
    %606 = arith.mulf %604, %605 : vector<8x256xf32>
    %607 = arith.addf %601, %606 : vector<8x256xf32>
    %608 = vector.extract_strided_slice %1 {offsets = [0, 13], sizes = [8, 1], strides = [1, 1]} : vector<8x128xf32> to vector<8x1xf32>
    %609 = vector.extract_strided_slice %576 {offsets = [5, 0], sizes = [1, 256], strides = [1, 1]} : vector<8x256xf32> to vector<1x256xf32>
    %610 = vector.broadcast %608 : vector<8x1xf32> to vector<8x256xf32>
    %611 = vector.broadcast %609 : vector<1x256xf32> to vector<8x256xf32>
    %612 = arith.mulf %610, %611 : vector<8x256xf32>
    %613 = arith.addf %607, %612 : vector<8x256xf32>
    %614 = vector.extract_strided_slice %1 {offsets = [0, 14], sizes = [8, 1], strides = [1, 1]} : vector<8x128xf32> to vector<8x1xf32>
    %615 = vector.extract_strided_slice %576 {offsets = [6, 0], sizes = [1, 256], strides = [1, 1]} : vector<8x256xf32> to vector<1x256xf32>
    %616 = vector.broadcast %614 : vector<8x1xf32> to vector<8x256xf32>
    %617 = vector.broadcast %615 : vector<1x256xf32> to vector<8x256xf32>
    %618 = arith.mulf %616, %617 : vector<8x256xf32>
    %619 = arith.addf %613, %618 : vector<8x256xf32>
    %620 = vector.extract_strided_slice %1 {offsets = [0, 15], sizes = [8, 1], strides = [1, 1]} : vector<8x128xf32> to vector<8x1xf32>
    %621 = vector.extract_strided_slice %576 {offsets = [7, 0], sizes = [1, 256], strides = [1, 1]} : vector<8x256xf32> to vector<1x256xf32>
    %622 = vector.broadcast %620 : vector<8x1xf32> to vector<8x256xf32>
    %623 = vector.broadcast %621 : vector<1x256xf32> to vector<8x256xf32>
    %624 = arith.mulf %622, %623 : vector<8x256xf32>
    %625 = arith.addf %619, %624 : vector<8x256xf32>
    %626 = vector.extract_strided_slice %1 {offsets = [0, 117], sizes = [8, 1], strides = [1, 1]} : vector<8x128xf32> to vector<8x1xf32>
    %627 = vector.broadcast %626 : vector<8x1xf32> to vector<8x256xf32>
    %628 = arith.addf %625, %627 : vector<8x256xf32>
    %c0_58 = arith.constant 0 : index
    %c0_59 = arith.constant 0 : index
    %629 = vector.load %arg2[%c0_58, %c0_59] : memref<8x256xf32, #tpu.memory_space<vmem>>, vector<8x256xf32>
    tpu.vector_store %arg2[%c0_58, %c0_59], %628 {strides = array<i32>} : memref<8x256xf32, #tpu.memory_space<vmem>>, vector<8x256xf32>,
    return
  }
}

</mosaic_0001>

<bundles_post_ra>
// kernel: dual_adaptive_neural_block.1
= control target key start
LH: loop header
LB: loop body
LE: loop exit
PB: predicated region body
PF: predicated region fallthrough
CT: control target
= control target key end

     0   :  { %v1586_v0 = vmov 2   ;;  %v1587_v1 = vmov 0   ;;  %v1588_v3 = vmov 3   ;;  %v1589_v4 = vmov 1   ;;  %s1635_s15 = smov 3   ;;  %s1636_s16 = smov 1   ;;  %s2657_s1 = inlined_call_operand.vmem [shape: f32[8,128], index: 1, kind: input, shape index: {}]   ;;  %s2658_s0 = inlined_call_operand.vmem [shape: f32[8,256], index: 0, kind: input, shape index: {}]   ;;  %s2659_s2 = inlined_call_operand.vmem [shape: f32[8,256], index: 2, kind: output, shape index: {}]  }
   0x1   :  { %1456 = vset.pattern.permute.xlu1 %v1586_v0  ;;  %1454 = vset.pattern.permute.xlu0 %v1587_v1  ;;  %v1734_v2 = vld [vmem:[%s2657_s1] sm:$0xff]  ;;  %v1590_v5 = vmov 4   ;;  %v1591_v6 = vmov 5   ;;  %v1592_v7 = vmov 6   ;;  %v1593_v8 = vmov 114   ;;  %v1794_v53 = vld [vmem:[%s2658_s0 + $0x8] sm:$0xff] }
   0x2   :  { %48 = vperm.xlu1 %1456, %v1734_v2   ;;  %16 = vperm.xlu0 %1454, %v1734_v2   ;;  %v1594_v9 = vmov 7   ;;  %v1595_v10 = vmov 16   ;;  %v1596_v11 = vmov 65   ;;  %v1597_v12 = vmov 66   ;;  %v1789_v52 = vld [vmem:[%s2658_s0] sm:$0xff]  ;;  %s1634_s0 = smov 2  }
   0x3   :  { %v1598_v13 = vmov 17   ;;  %v1599_v14 = vmov 19   ;;  %v1600_v15 = vmov 18   ;;  %v1601_v16 = vmov 69   ;;  %s1637_s17 = smov 127   ;;  %s1638_s18 = smov 126  }
   0x4   :  { %v1602_v17 = vmov 67   ;;  %v1603_v18 = vmov 22   ;;  %v1604_v19 = vmov 68   ;;  %v1605_v20 = vmov 72   ;;  %s1639_s19 = smov 125   ;;  %s1679_s20 = smov 48  }
   0x5   :  { %v1606_v21 = vmov 20   ;;  %v1607_v22 = vmov 25   ;;  %v1608_v23 = vmov 21   ;;  %v1609_v24 = vmov 75   ;;  %s1680_s21 = smov 32   ;;  %s1681_s22 = smov 16  }
   0x6   :  { %1457 = vset.pattern.permute.xlu1 %v1588_v3  ;;  %1455 = vset.pattern.permute.xlu0 %v1589_v4  ;;  %v1610_v25 = vmov 70   ;;  %v1611_v26 = vmov 28   ;;  %v1612_v27 = vmov 71   ;;  %v1613_v28 = vmov 78   ;;  %s1706_s25 = smov 96   ;;  %s1707_s26 = smov 80  }
   0x7   :  { %64 = vperm.xlu1 %1457, %v1734_v2   ;;  %32 = vperm.xlu0 %1455, %v1734_v2   ;;  %v1614_v29 = vmov 23   ;;  %v1615_v30 = vmov 30   ;;  %v1616_v31 = vmov 24   ;;  %v1617_v32 = vmov 80  }
   0x8   :  { %v1618_v33 = vmov 73   ;;  %v1619_v34 = vmov 33   ;;  %v1620_v35 = vmov 74   ;;  %v1621_v36 = vmov 83  }
   0x9   :  { %v1622_v37 = vmov 26   ;;  %v1623_v38 = vmov 27   ;;  %v1624_v39 = vmov 76   ;;  %v1625_v40 = vmov 77  }
   0xa   :  { %v1626_v41 = vmov 29   ;;  %v1627_v42 = vmov 79   ;;  %v1628_v43 = vmov 31   ;;  %v19_v44 = vlaneseq }
   0xb   :  { %1458 = vset.pattern.permute.xlu1 %v1590_v5  ;;  %1459 = vset.pattern.permute.xlu0 %v1591_v6  ;;  %v1629_v46 = vmov 32   ;;  %v1630_v57 = vmov 81  }
   0xc   :  { %80 = vperm.xlu1 %1458, %v1734_v2   ;;  %96 = vperm.xlu0 %1459, %v1734_v2   ;;  %v20_v45 = vshrl.u32 %v19_v44, 7 }
   0xe   :  { %v1780_v47 = vsub.s32 0, %v20_v45  ;;  %v1782_v48 = vsub.s32 1, %v20_v45  ;;  %v1784_v49 = vsub.s32 2, %v20_v45  ;;  %v1796_v54 = vsub.s32 3, %v20_v45 }
   0xf   :  { %v1807_v60 = vsub.s32 4, %v20_v45  ;;  %v1817_v4 = vsub.s32 5, %v20_v45 }
  0x10   :  { %1460 = vset.pattern.permute.xlu1 %v1592_v7  ;;  %1462 = vset.pattern.permute.xlu0 %v1593_v8  ;;  %2693 = vst [vmem:[#allocation2_spill] sm:$0xff] %v1780_v47  ;;  %2694 = vst [vmem:[#allocation3_spill] sm:$0xff] %v1782_v48  ;;  %v22_v55 = vrot.slane %v1789_v52, %v1780_v47  ;;  %v26_v56 = vrot.slane %v1794_v53, %v1780_v47 }
  0x11   :  { %112 = vperm.xlu1 %1460, %v1734_v2   ;;  %144 = vperm.xlu0 %1462, %v1734_v2   ;;  %2695 = vst [vmem:[#allocation4_spill] sm:$0xff] %v1784_v49  ;;  %2696 = vst [vmem:[#allocation5_spill] sm:$0xff] %v1796_v54  ;;  %v38_v58 = vrot.slane %v1789_v52, %v1782_v48  ;;  %v42_v59 = vrot.slane %v1794_v53, %v1782_v48 }
  0x12   :  { %2697 = vst [vmem:[#allocation6_spill] sm:$0xff] %v1807_v60  ;;  %v54_v61 = vrot.slane %v1789_v52, %v1784_v49  ;;  %v58_v62 = vrot.slane %v1794_v53, %v1784_v49  ;;  %v70_v0 = vrot.slane %v1789_v52, %v1796_v54  ;;  %v74_v1 = vrot.slane %v1794_v53, %v1796_v54 }
  0x13   :  { %2698 = vst [vmem:[#allocation7_spill] sm:$0xff] %v1817_v4 }
  0x15   :  { %1461 = vset.pattern.permute.xlu1 %v1594_v9  ;;  %1463 = vset.pattern.permute.xlu0 %v1595_v10  ;;  %v1631_v9 = vmov 82   ;;  %v86_v10 = vrot.slane %v1789_v52, %v1807_v60 }
  0x16   :  { %128 = vperm.xlu1 %1461, %v1734_v2   ;;  %221 = vperm.xlu0 %1463, %v1734_v2  }
  0x1a   :  { %1464 = vset.pattern.permute.xlu1 %v1596_v11  ;;  %1466 = vset.pattern.permute.xlu0 %v1597_v12  ;;  %v90_v11 = vrot.slane %v1794_v53, %v1807_v60 }
  0x1b   :  { %229 = vperm.xlu1 %1464, %v1734_v2   ;;  %245 = vperm.xlu0 %1466, %v1734_v2  }
  0x1f   :  { %1465 = vset.pattern.permute.xlu1 %v1598_v13  ;;  %1469 = vset.pattern.permute.xlu0 %v1599_v14 }
  0x20   :  { %237 = vperm.xlu1 %1465, %v1734_v2   ;;  %269 = vperm.xlu0 %1469, %v1734_v2  }
  0x24   :  { %1467 = vset.pattern.permute.xlu1 %v1600_v15  ;;  %1472 = vset.pattern.permute.xlu0 %v1601_v16  ;;  %v102_v16 = vrot.slane %v1789_v52, %v1817_v4 }
  0x25   :  { %253 = vperm.xlu1 %1467, %v1734_v2   ;;  %293 = vperm.xlu0 %1472, %v1734_v2  }
  0x29   :  { %1468 = vset.pattern.permute.xlu1 %v1602_v17  ;;  %1475 = vset.pattern.permute.xlu0 %v1603_v18  ;;  %v1826_v17 = vsub.s32 6, %v20_v45 }
  0x2a   :  { %261 = vperm.xlu1 %1468, %v1734_v2   ;;  %317 = vperm.xlu0 %1475, %v1734_v2  }
  0x2b   :  { %2699 = vst [vmem:[#allocation8_spill] sm:$0xff] %v1826_v17 }
  0x2e   :  { %1470 = vset.pattern.permute.xlu1 %v1604_v19  ;;  %1478 = vset.pattern.permute.xlu0 %v1605_v20 }
  0x2f   :  { %277 = vperm.xlu1 %1470, %v1734_v2   ;;  %364 = vperm.xlu0 %1478, %v1734_v2  }
  0x33   :  { %1471 = vset.pattern.permute.xlu1 %v1606_v21  ;;  %1481 = vset.pattern.permute.xlu0 %v1607_v22 }
  0x34   :  { %285 = vperm.xlu1 %1471, %v1734_v2   ;;  %388 = vperm.xlu0 %1481, %v1734_v2  }
  0x38   :  { %1473 = vset.pattern.permute.xlu1 %v1608_v23  ;;  %1484 = vset.pattern.permute.xlu0 %v1609_v24 }
  0x39   :  { %301 = vperm.xlu1 %1473, %v1734_v2   ;;  %412 = vperm.xlu0 %1484, %v1734_v2  }
  0x3d   :  { %1474 = vset.pattern.permute.xlu1 %v1610_v25  ;;  %1487 = vset.pattern.permute.xlu0 %v1611_v26  ;;  %v106_v26 = vrot.slane %v1794_v53, %v1817_v4 }
  0x3e   :  { %309 = vperm.xlu1 %1474, %v1734_v2   ;;  %436 = vperm.xlu0 %1487, %v1734_v2  }
  0x42   :  { %1476 = vset.pattern.permute.xlu1 %v1612_v27  ;;  %1490 = vset.pattern.permute.xlu0 %v1613_v28 }
  0x43   :  { %325 = vperm.xlu1 %1476, %v1734_v2   ;;  %460 = vperm.xlu0 %1490, %v1734_v2  }
  0x47   :  { %1477 = vset.pattern.permute.xlu1 %v1614_v29  ;;  %1491 = vset.pattern.permute.xlu0 %v1615_v30  ;;  %v1632_v29 = vmov 34  }
  0x48   :  { %356 = vperm.xlu1 %1477, %v1734_v2   ;;  %491 = vperm.xlu0 %1491, %v1734_v2  }
  0x4c   :  { %1479 = vset.pattern.permute.xlu1 %v1616_v31  ;;  %1494 = vset.pattern.permute.xlu0 %v1617_v32  ;;  %v118_v31 = vrot.slane %v1789_v52, %v1826_v17  ;;  %v1833_v32 = vsub.s32 7, %v20_v45 }
  0x4d   :  { %372 = vperm.xlu1 %1479, %v1734_v2   ;;  %515 = vperm.xlu0 %1494, %v1734_v2  }
  0x4e   :  { %2700 = vst [vmem:[#allocation9_spill] sm:$0xff] %v1833_v32 }
  0x51   :  { %1480 = vset.pattern.permute.xlu1 %v1618_v33  ;;  %1497 = vset.pattern.permute.xlu0 %v1619_v34 }
  0x52   :  { %380 = vperm.xlu1 %1480, %v1734_v2   ;;  %539 = vperm.xlu0 %1497, %v1734_v2  }
  0x56   :  { %1482 = vset.pattern.permute.xlu1 %v1620_v35  ;;  %1500 = vset.pattern.permute.xlu0 %v1621_v36 }
  0x57   :  { %396 = vperm.xlu1 %1482, %v1734_v2  }
  0x5b   :  { %1483 = vset.pattern.permute.xlu1 %v1622_v37  ;;  %v122_v37 = vrot.slane %v1794_v53, %v1826_v17 }
  0x5c   :  { %404 = vperm.xlu1 %1483, %v1734_v2  }
  0x60   :  { %1485 = vset.pattern.permute.xlu1 %v1623_v38 }
  0x61   :  { %420 = vperm.xlu1 %1485, %v1734_v2  }
  0x65   :  { %1486 = vset.pattern.permute.xlu1 %v1624_v39 }
  0x66   :  { %428 = vperm.xlu1 %1486, %v1734_v2  }
  0x6a   :  { %1488 = vset.pattern.permute.xlu1 %v1625_v40  ;;  %v134_v40 = vrot.slane %v1789_v52, %v1833_v32 }
  0x6b   :  { %444 = vperm.xlu1 %1488, %v1734_v2  }
  0x6f   :  { %1489 = vset.pattern.permute.xlu1 %v1626_v41  ;;  %v138_v41 = vrot.slane %v1794_v53, %v1833_v32 }
  0x70   :  { %452 = vperm.xlu1 %1489, %v1734_v2  }
  0x74   :  { %1492 = vset.pattern.permute.xlu1 %v1627_v42  ;;  %v1633_v42 = vmov 35  }
  0x75   :  { %499 = vperm.xlu1 %1492, %v1734_v2  }
  0x79   :  { %1493 = vset.pattern.permute.xlu1 %v1628_v43 }
  0x7a   :  { %507 = vperm.xlu1 %1493, %v1734_v2  }
  0x7e   :  { %1495 = vset.pattern.permute.xlu1 %v1629_v46 }
  0x7f   :  { %523 = vperm.xlu1 %1495, %v1734_v2  }
  0x81   :  { %v49_v50 = vpop.permute.xlu1 %48  ;;  %v17_v51 = vpop.permute.xlu0 %16 }
  0x82   :  { %v27_v5 = vmul.f32 %v22_v55, %v17_v51  ;;  %v28_v6 = vmul.f32 %v26_v56, %v17_v51  ;;  %v59_v12 = vmul.f32 %v54_v61, %v49_v50  ;;  %v60_v13 = vmul.f32 %v58_v62, %v49_v50 }
  0x83   :  { %1496 = vset.pattern.permute.xlu1 %v1630_v57 }
  0x84   :  { %531 = vperm.xlu1 %1496, %v1734_v2  }
  0x86   :  { %v65_v63 = vpop.permute.xlu1 %64  ;;  %v33_v3 = vpop.permute.xlu0 %32 }
  0x87   :  { %v43_v7 = vmul.f32 %v38_v58, %v33_v3  ;;  %v44_v8 = vmul.f32 %v42_v59, %v33_v3  ;;  %v75_v18 = vmul.f32 %v70_v0, %v65_v63  ;;  %v76_v19 = vmul.f32 %v74_v1, %v65_v63 }
  0x88   :  { %1498 = vset.pattern.permute.xlu1 %v1631_v9 }
  0x89   :  { %v45_v14 = vadd.f32 %v43_v7, %v27_v5  ;;  %v46_v15 = vadd.f32 %v44_v8, %v28_v6  ;;  %547 = vperm.xlu1 %1498, %v1734_v2   ;;  %v1640_v5 = vmov 36   ;;  %v1641_v6 = vmov 84  }
  0x8a   :  { %v1642_v8 = vmov 86  }
  0x8b   :  { %v61_v20 = vadd.f32 %v59_v12, %v45_v14  ;;  %v62_v21 = vadd.f32 %v60_v13, %v46_v15  ;;  %v81_v22 = vpop.permute.xlu1 %80  ;;  %v97_v23 = vpop.permute.xlu0 %96  ;;  %v1645_v13 = vmov 89   ;;  %v1646_v14 = vmov 37  }
  0x8c   :  { %v91_v24 = vmul.f32 %v86_v10, %v81_v22  ;;  %v92_v25 = vmul.f32 %v90_v11, %v81_v22  ;;  %v107_v30 = vmul.f32 %v102_v16, %v97_v23  ;;  %v108_v35 = vmul.f32 %v106_v26, %v97_v23 }
  0x8d   :  { %v77_v27 = vadd.f32 %v75_v18, %v61_v20  ;;  %v78_v28 = vadd.f32 %v76_v19, %v62_v21  ;;  %1499 = vset.pattern.permute.xlu1 %v1632_v29  ;;  %v1643_v10 = vmov 39   ;;  %v1644_v11 = vmov 85  }
  0x8e   :  { %555 = vperm.xlu1 %1499, %v1734_v2   ;;  %v1647_v16 = vmov 42   ;;  %v1648_v18 = vmov 38   ;;  %v1649_v20 = vmov 92   ;;  %v1650_v21 = vmov 87  }
  0x8f   :  { %v93_v33 = vadd.f32 %v91_v24, %v77_v27  ;;  %v94_v34 = vadd.f32 %v92_v25, %v78_v28  ;;  %v1651_v23 = vmov 45   ;;  %v1652_v24 = vmov 88  }
  0x90   :  { %v113_v36 = vpop.permute.xlu1 %112  ;;  %v145_v58 = vpop.permute.xlu0 %144  ;;  %v1653_v27 = vmov 95   ;;  %v1654_v28 = vmov 40  }
  0x91   :  { %v109_v38 = vadd.f32 %v107_v30, %v93_v33  ;;  %v123_v39 = vmul.f32 %v118_v31, %v113_v36  ;;  %v110_v43 = vadd.f32 %v108_v35, %v94_v34  ;;  %v124_v45 = vmul.f32 %v122_v37, %v113_v36 }
  0x92   :  { %1501 = vset.pattern.permute.xlu1 %v1633_v42  ;;  %v1655_v31 = vmov 48   ;;  %v1656_v33 = vmov 41   ;;  %v1657_v35 = vmov 100   ;;  %v1658_v37 = vmov 90  }
  0x93   :  { %v125_v50 = vadd.f32 %v123_v39, %v109_v38  ;;  %v126_v56 = vadd.f32 %v124_v45, %v110_v43  ;;  %v1661_v43 = vmov 109  }
  0x95   :  { %v129_v46 = vpop.permute.xlu1 %128  ;;  %v1896_v25 = vpop.permute.xlu0 %221 }
  0x96   :  { %v139_v51 = vmul.f32 %v134_v40, %v129_v46  ;;  %v140_v55 = vmul.f32 %v138_v41, %v129_v46  ;;  %v1659_v40 = vmov 107   ;;  %v1660_v41 = vmov 91  }
  0x97   :  { %v1662_v46 = vmov 43  }
  0x98   :  { %v141_v57 = vadd.f32 %v139_v51, %v125_v50  ;;  %v142_v59 = vadd.f32 %v140_v55, %v126_v56  ;;  %v1663_v51 = vmov 110   ;;  %v1664_v56 = vmov 44  }
  0x9a   :  { %v1841_v61 = vadd.f32 %v145_v58, %v141_v57  ;;  %v1843_v62 = vpop.permute.xlu1 %229  ;;  %v1847_v52 = vadd.f32 %v145_v58, %v142_v59  ;;  %v1902_v29 = vpop.permute.xlu0 %245  ;;  %v1665_v58 = vmov 93  }
  0x9c   :  { %2701 = vst [vmem:[#allocation10_spill] sm:$0xff] %v1841_v61  ;;  %165 = vrot.lane.b32.xlu0 %v1841_v61, %s1634_s0  ;;  %154 = vrot.lane.b32.xlu1 %v1841_v61, %s1635_s15  ;;  %2702 = vst [vmem:[#allocation11_spill] sm:$0xff] %v1847_v52 }
  0x9f   :  { %v1849_v53 = vpop.permute.xlu1 %237  ;;  %v1910_v36 = vpop.permute.xlu0 %269 }
  0xa0   :  { %176 = vrot.lane.b32.xlu0 %v1841_v61, %s1636_s16  ;;  %156 = vrot.lane.b32.xlu1 %v1847_v52, %s1635_s15 }
  0xa4   :  { %187 = vrot.lane.b32.xlu0 %v1841_v61, %s1637_s17  ;;  %167 = vrot.lane.b32.xlu1 %v1847_v52, %s1634_s0  ;;  %v1855_v63 = vpop.permute.xlu1 %253  ;;  %v1916_v39 = vpop.permute.xlu0 %293 }
  0xa8   :  { %198 = vrot.lane.b32.xlu0 %v1841_v61, %s1638_s18  ;;  %178 = vrot.lane.b32.xlu1 %v1847_v52, %s1636_s16 }
  0xa9   :  { %v1859_v0 = vpop.permute.xlu1 %261  ;;  %v1922_v45 = vpop.permute.xlu0 %317 }
  0xac   :  { %209 = vrot.lane.b32.xlu0 %v1841_v61, %s1639_s19  ;;  %189 = vrot.lane.b32.xlu1 %v1847_v52, %s1637_s17 }
  0xae   :  { %v1863_v1 = vpop.permute.xlu1 %277  ;;  %v1928_v55 = vpop.permute.xlu0 %364 }
  0xaf   :  { %v2002_v32 = vmul.f32 %v1863_v1, %v1847_v52 }
  0xb0   :  { %563 = vperm.xlu0 %1500, %v1734_v2   ;;  %200 = vrot.lane.b32.xlu1 %v1847_v52, %s1638_s18 }
  0xb3   :  { %v1867_v3 = vpop.permute.xlu1 %285  ;;  %v1933_v59 = vpop.permute.xlu0 %388 }
  0xb4   :  { %1503 = vset.pattern.permute.xlu0 %v1640_v5  ;;  %571 = vperm.xlu1 %1501, %v1734_v2  }
  0xb5   :  { %587 = vperm.xlu0 %1503, %v1734_v2  }
  0xb8   :  { %1502 = vset.pattern.permute.xlu1 %v1641_v6  ;;  %v1871_v7 = vpop.permute.xlu1 %301  ;;  %v1666_v6 = vmov 94  }
  0xb9   :  { %1506 = vset.pattern.permute.xlu0 %v1642_v8  ;;  %579 = vperm.xlu1 %1502, %v1734_v2   ;;  %v1939_v8 = vpop.permute.xlu0 %412 }
  0xba   :  { %634 = vperm.xlu0 %1506, %v1734_v2   ;;  %v2025_v4 = vmul.f32 %v1939_v8, %v1847_v52 }
  0xbc   :  { %2713 = vst [vmem:[#allocation22_spill] sm:$0xff] %v2025_v4 }
  0xbd   :  { %211 = vrot.lane.b32.xlu1 %v1847_v52, %s1639_s19  ;;  %v1876_v9 = vpop.permute.xlu1 %309 }
  0xbe   :  { %1509 = vset.pattern.permute.xlu0 %v1643_v10  ;;  %1504 = vset.pattern.permute.xlu1 %v1644_v11  ;;  %v1667_v11 = vmov 46  }
  0xbf   :  { %658 = vperm.xlu0 %1509, %v1734_v2  }
  0xc1   :  { %595 = vperm.xlu1 %1504, %v1734_v2  }
  0xc2   :  { %v1880_v12 = vpop.permute.xlu1 %325 }
  0xc3   :  { %2703 = vst [vmem:[#allocation12_spill] sm:$0xff] %v1880_v12  ;;  %1512 = vset.pattern.permute.xlu0 %v1645_v13  ;;  %v1943_v13 = vpop.permute.xlu0 %436 }
  0xc4   :  { %682 = vperm.xlu0 %1512, %v1734_v2   ;;  %2706 = vst [vmem:[#allocation15_spill] sm:$0xff] %v1943_v13 }
  0xc5   :  { %1505 = vset.pattern.permute.xlu1 %v1646_v14 }
  0xc6   :  { %626 = vperm.xlu1 %1505, %v1734_v2  }
  0xc7   :  { %v1884_v15 = vpop.permute.xlu1 %356 }
  0xc8   :  { %1515 = vset.pattern.permute.xlu0 %v1647_v16  ;;  %v1668_v16 = vmov 47  }
  0xc9   :  { %706 = vperm.xlu0 %1515, %v1734_v2  }
  0xca   :  { %1507 = vset.pattern.permute.xlu1 %v1648_v18  ;;  %v1949_v18 = vpop.permute.xlu0 %460 }
  0xcb   :  { %642 = vperm.xlu1 %1507, %v1734_v2   ;;  %2707 = vst [vmem:[#allocation16_spill] sm:$0xff] %v1949_v18 }
  0xcc   :  { %v1888_v19 = vpop.permute.xlu1 %372 }
  0xcd   :  { %1518 = vset.pattern.permute.xlu0 %v1649_v20 }
  0xce   :  { %730 = vperm.xlu0 %1518, %v1734_v2  }
  0xcf   :  { %1508 = vset.pattern.permute.xlu1 %v1650_v21  ;;  %v1669_v21 = vmov 96  }
  0xd0   :  { %650 = vperm.xlu1 %1508, %v1734_v2  }
  0xd1   :  { %v1892_v22 = vpop.permute.xlu1 %380 }
  0xd2   :  { %1521 = vset.pattern.permute.xlu0 %v1651_v23 }
  0xd3   :  { %758 = vperm.xlu0 %1521, %v1734_v2  }
  0xd4   :  { %1510 = vset.pattern.permute.xlu1 %v1652_v24  ;;  %v1956_v24 = vpop.permute.xlu0 %491 }
  0xd5   :  { %666 = vperm.xlu1 %1510, %v1734_v2  }
  0xd6   :  { %v1898_v26 = vpop.permute.xlu1 %396 }
  0xd7   :  { %1524 = vset.pattern.permute.xlu0 %v1653_v27  ;;  %v1670_v27 = vmov 97  }
  0xd8   :  { %782 = vperm.xlu0 %1524, %v1734_v2  }
  0xd9   :  { %1511 = vset.pattern.permute.xlu1 %v1654_v28 }
  0xda   :  { %674 = vperm.xlu1 %1511, %v1734_v2  }
  0xdb   :  { %v1904_v30 = vpop.permute.xlu1 %404 }
  0xdc   :  { %1527 = vset.pattern.permute.xlu0 %v1655_v31  ;;  %v1959_v31 = vpop.permute.xlu0 %515 }
  0xdd   :  { %806 = vperm.xlu0 %1527, %v1734_v2  }
  0xde   :  { %1513 = vset.pattern.permute.xlu1 %v1656_v33  ;;  %v1962_v33 = vand.u32 127, %v19_v44 }
  0xdf   :  { %690 = vperm.xlu1 %1513, %v1734_v2  }
  0xe0   :  { %v1908_v34 = vpop.permute.xlu1 %420  ;;  %vm158_vm0 = vcmp.lt.s32.totalorder %v1962_v33, 3  ;;  %vm169_vm3 = vcmp.lt.s32.totalorder %v1962_v33, 2  ;;  %vm180_vm6 = vcmp.lt.s32.totalorder %v1962_v33, 1  ;;  %vm191_vm9 = vcmp.lt.s32.totalorder %v1962_v33, 127 }
  0xe1   :  { %1530 = vset.pattern.permute.xlu0 %v1657_v35  ;;  %v1671_v35 = vmov 49   ;;  %vm202_vm11 = vcmp.lt.s32.totalorder %v1962_v33, 126  ;;  %vm213_vm15 = vcmp.lt.s32.totalorder %v1962_v33, 125 }
  0xe2   :  { %885 = vperm.xlu0 %1530, %v1734_v2  }
  0xe3   :  { %1514 = vset.pattern.permute.xlu1 %v1658_v37 }
  0xe4   :  { %698 = vperm.xlu1 %1514, %v1734_v2  }
  0xe5   :  { %v1914_v38 = vpop.permute.xlu1 %428 }
  0xe6   :  { %1533 = vset.pattern.permute.xlu0 %v1659_v40  ;;  %v1966_v40 = vadd.s32 128, %v1962_v33 }
  0xe7   :  { %1020 = vperm.xlu0 %1533, %v1734_v2  }
  0xe8   :  { %1516 = vset.pattern.permute.xlu1 %v1660_v41  ;;  %2709 = vst [vmem:[#allocation18_spill] sm:$0xff] %v1966_v40  ;;  %v1968_v41 = vpop.permute.xlu0 %539  ;;  %v1975_v44 = vand.u32 15, %v1966_v40 }
  0xe9   :  { %714 = vperm.xlu1 %1516, %v1734_v2   ;;  %2710 = vst [vmem:[#allocation19_spill] sm:$0xff] %v1968_v41  ;;  %v2029_v17 = vmul.f32 %v1968_v41, %v1847_v52 }
  0xea   :  { %v1920_v42 = vpop.permute.xlu1 %444  ;;  %vm162_vm2 = vcmp.ge.s32.totalorder %v1975_v44, 3  ;;  %vm173_vm5 = vcmp.ge.s32.totalorder %v1975_v44, 2  ;;  %vm184_vm8 = vcmp.ge.s32.totalorder %v1975_v44, 1  ;;  %vm195_vm10 = vcmp.lt.s32.totalorder %v1975_v44, 15 }
  0xeb   :  { %2704 = vst [vmem:[#allocation13_spill] sm:$0xff] %v1920_v42  ;;  %1536 = vset.pattern.permute.xlu0 %v1661_v43  ;;  %v1672_v43 = vmov 101   ;;  %2714 = vst [vmem:[#allocation23_spill] sm:$0xff] %v2029_v17  ;;  %vm206_vm13 = vcmp.lt.s32.totalorder %v1975_v44, 14 }
  0xec   :  { %1052 = vperm.xlu0 %1536, %v1734_v2  }
  0xed   :  { %1517 = vset.pattern.permute.xlu1 %v1662_v46 }
  0xee   :  { %722 = vperm.xlu1 %1517, %v1734_v2  }
  0xef   :  { %v1926_v50 = vpop.permute.xlu1 %452 }
  0xf0   :  { %2705 = vst [vmem:[#allocation14_spill] sm:$0xff] %v1926_v50  ;;  %1539 = vset.pattern.permute.xlu0 %v1663_v51  ;;  %v1972_v51 = vand.u32 15, %v1962_v33  ;;  %v1676_v50 = vmov 98  }
  0xf2   :  { %1519 = vset.pattern.permute.xlu1 %v1664_v56  ;;  %vm161_vm1 = vcmp.ge.s32.totalorder %v1972_v51, 3  ;;  %vm172_vm4 = vcmp.ge.s32.totalorder %v1972_v51, 2  ;;  %vm183_vm7 = vcmp.ge.s32.totalorder %v1972_v51, 1  ;;  %vm194_vm12 = vcmp.lt.s32.totalorder %v1972_v51, 15 }
  0xf3   :  { %742 = vperm.xlu1 %1519, %v1734_v2   ;;  %vm205_vm14 = vcmp.lt.s32.totalorder %v1972_v51, 14 }
  0xf4   :  { %v1931_v57 = vpop.permute.xlu1 %499 }
  0xf7   :  { %1520 = vset.pattern.permute.xlu1 %v1665_v58  ;;  %v1673_v58 = vmov 102  }
  0xf8   :  { %750 = vperm.xlu1 %1520, %v1734_v2  }
  0xf9   :  { %v1936_v5 = vpop.permute.xlu1 %507 }
  0xfc   :  { %1522 = vset.pattern.permute.xlu1 %v1666_v6 }
  0xfd   :  { %766 = vperm.xlu1 %1522, %v1734_v2  }
  0xfe   :  { %v1941_v10 = vpop.permute.xlu1 %523 }
 0x101   :  { %1523 = vset.pattern.permute.xlu1 %v1667_v11  ;;  %v1988_v11 = vmul.f32 %v1910_v36, %v1841_v61 }
 0x102   :  { %774 = vperm.xlu1 %1523, %v1734_v2  }
 0x103   :  { %v1946_v14 = vpop.permute.xlu1 %531 }
 0x106   :  { %1525 = vset.pattern.permute.xlu1 %v1668_v16 }
 0x107   :  { %790 = vperm.xlu1 %1525, %v1734_v2  }
 0x108   :  { %v1951_v20 = vpop.permute.xlu1 %547 }
 0x109   :  { %2708 = vst [vmem:[#allocation17_spill] sm:$0xff] %v1951_v20  ;;  %v2050_v54 = vmul.f32 %v1951_v20, %v1847_v52 }
 0x10b   :  { %1526 = vset.pattern.permute.xlu1 %v1669_v21  ;;  %2716 = vst [vmem:[#allocation25_spill] sm:$0xff] %v2050_v54 }
 0x10c   :  { %798 = vperm.xlu1 %1526, %v1734_v2  }
 0x10d   :  { %v1954_v23 = vpop.permute.xlu1 %555 }
 0x10e   :  { %v166_v56 = vpop.permute.xlu0 %165 }
 0x110   :  { %1528 = vset.pattern.permute.xlu1 %v1670_v27  ;;  %v1993_v27 = vmul.f32 %v1910_v36, %v1847_v52  ;;  %v2009_v36 = vmul.f32 %v1939_v8, %v1841_v61 }
 0x111   :  { %814 = vperm.xlu1 %1528, %v1734_v2   ;;  %v155_v28 = vpop.permute.xlu1 %154 }
 0x115   :  { %1529 = vset.pattern.permute.xlu1 %v1671_v35  ;;  %v157_v37 = vpop.permute.xlu1 %156  ;;  %v177_v35 = vpop.permute.xlu0 %176 }
 0x116   :  { %822 = vperm.xlu1 %1529, %v1734_v2   ;;  %v159_v16 = vsel %vm158_vm0, %v155_v28, %v157_v37  ;;  %v160_v21 = vsel %vm158_vm0, %v157_v37, %v155_v28  ;;  %vm216_vm0 = vcmp.lt.s32.totalorder %v1972_v51, 13 }
 0x117   :  { %v2013_v37 = vsel %vm161_vm1, %v160_v21, 0.0  ;;  %v2033_v21 = vmul.f32 %v1904_v30, %v1841_v61  ;;  %vm217_vm1 = vcmp.lt.s32.totalorder %v1975_v44, 13 }
 0x118   :  { %2711 = vst [vmem:[#allocation20_spill] sm:$0xff] %v2013_v37  ;;  %v224_v40 = vmul.f32 %v1896_v25, %v2013_v37  ;;  %v2101_v4 = vmul.f32 %v1884_v15, %v2013_v37 }
 0x119   :  { %v168_v46 = vpop.permute.xlu1 %167 }
 0x11a   :  { %1531 = vset.pattern.permute.xlu1 %v1672_v43  ;;  %v1674_v43 = vmov 108   ;;  %v170_v28 = vsel %vm169_vm3, %v166_v56, %v168_v46 }
 0x11b   :  { %901 = vperm.xlu1 %1531, %v1734_v2  }
 0x11d   :  { %v179_v6 = vpop.permute.xlu1 %178 }
 0x11e   :  { %v182_v8 = vsel %vm180_vm6, %v179_v6, %v177_v35 }
 0x11f   :  { %1532 = vset.pattern.permute.xlu1 %v1673_v58  ;;  %v1998_v58 = vmul.f32 %v1863_v1, %v1841_v61  ;;  %v171_v1 = vsel %vm169_vm3, %v168_v46, %v166_v56  ;;  %v2039_v46 = vmul.f32 %v1904_v30, %v1847_v52  ;;  %v2043_v56 = vsel %vm173_vm5, %v170_v28, 0.0 }
 0x120   :  { %917 = vperm.xlu1 %1532, %v1734_v2   ;;  %v2054_v49 = vsel %vm172_vm4, %v171_v1, 0.0  ;;  %v1675_v30 = vmov 103   ;;  %v502_v28 = vmul.f32 %v1931_v57, %v2013_v37  ;;  %v494_v1 = vmul.f32 %v1956_v24, %v2013_v37 }
 0x121   :  { %2715 = vst [vmem:[#allocation24_spill] sm:$0xff] %v2039_v46  ;;  %v190_v60 = vpop.permute.xlu1 %189  ;;  %v518_v20 = vmul.f32 %v1959_v31, %v2054_v49  ;;  %v240_v54 = vmul.f32 %v1849_v53, %v2054_v49  ;;  %v510_v41 = vmul.f32 %v1936_v5, %v2054_v49  ;;  %v2097_v61 = vmul.f32 %v1928_v55, %v2013_v37 }
 0x122   :  { %v249_v13 = vmul.f32 %v1902_v29, %v2043_v56  ;;  %v248_v42 = vmul.f32 %v1902_v29, %v2054_v49  ;;  %vm471_vm3 = vcmp.lt.s32.totalorder %v1962_v33, 32  ;;  %vm345_vm4 = vcmp.ge.s32.totalorder %v1962_v33, 48 }
 0x123   :  { %v2124_v17 = vadd.f32 %v518_v20, %v502_v28  ;;  %v242_v12 = vadd.f32 %v240_v54, %v224_v40  ;;  %vm480_vm5 = vcmp.ge.s32.totalorder %v1962_v33, 32 }
 0x124   :  { %1534 = vset.pattern.permute.xlu1 %v1674_v43  ;;  %v2017_v43 = vsel %vm162_vm2, %v159_v16, 0.0  ;;  %v181_v16 = vsel %vm180_vm6, %v177_v35, %v179_v6  ;;  %v188_v35 = vpop.permute.xlu0 %187  ;;  %vm336_vm2 = vcmp.lt.s32.totalorder %v1962_v33, 48  ;;  %vm606_vm6 = vcmp.lt.s32.totalorder %v1962_v33, 16 }
 0x125   :  { %1036 = vperm.xlu1 %1534, %v1734_v2   ;;  %2712 = vst [vmem:[#allocation21_spill] sm:$0xff] %v2017_v43  ;;  %v503_v6 = vmul.f32 %v1931_v57, %v2017_v43  ;;  %v2063_v47 = vsel %vm184_vm8, %v181_v16, 0.0  ;;  %v225_v48 = vmul.f32 %v1896_v25, %v2017_v43  ;;  %v2075_v57 = vsel %vm183_vm7, %v182_v8, 0.0 }
 0x126   :  { %v241_v16 = vmul.f32 %v1849_v53, %v2043_v56  ;;  %v233_v52 = vmul.f32 %v1843_v62, %v2017_v43  ;;  %v232_v8 = vmul.f32 %v1843_v62, %v2013_v37  ;;  %v257_v25 = vmul.f32 %v1855_v63, %v2063_v47 }
 0x127   :  { %v193_v53 = vsel %vm191_vm9, %v190_v60, %v188_v35  ;;  %v511_v62 = vmul.f32 %v1936_v5, %v2043_v56  ;;  %v256_v18 = vmul.f32 %v1855_v63, %v2075_v57  ;;  %v2111_v46 = vmul.f32 %v1884_v15, %v2017_v43 }
 0x128   :  { %v243_v37 = vadd.f32 %v241_v16, %v225_v48  ;;  %v199_v5 = vpop.permute.xlu0 %198  ;;  %v192_v63 = vsel %vm191_vm9, %v188_v35, %v190_v60  ;;  %v2130_v48 = vsel %vm195_vm10, %v193_v53, 0.0  ;;  %v2134_v16 = vadd.f32 %v510_v41, %v494_v1 }
 0x129   :  { %1535 = vset.pattern.permute.xlu1 %v1675_v30  ;;  %v495_v30 = vmul.f32 %v1956_v24, %v2017_v43  ;;  %v519_v24 = vmul.f32 %v1959_v31, %v2043_v56  ;;  %v201_v31 = vpop.permute.xlu1 %200  ;;  %v2140_v60 = vmul.f32 %v1946_v14, %v2075_v57  ;;  %v258_v54 = vadd.f32 %v256_v18, %v242_v12 }
 0x12a   :  { %933 = vperm.xlu1 %1535, %v1734_v2   ;;  %v204_v29 = vsel %vm202_vm11, %v201_v31, %v199_v5  ;;  %v2145_v40 = vsel %vm194_vm12, %v192_v63, 0.0  ;;  %v2149_v41 = vmul.f32 %v1946_v14, %v2063_v47  ;;  %v527_v28 = vmul.f32 %v1941_v10, %v2063_v47 }
 0x12b   :  { %v2126_v15 = vadd.f32 %v519_v24, %v503_v6  ;;  %v513_v20 = vadd.f32 %v511_v62, %v495_v30  ;;  %v265_v12 = vmul.f32 %v1859_v0, %v2063_v47  ;;  %v2161_v18 = vsel %vm206_vm13, %v204_v29, 0.0 }
 0x12c   :  { %v2165_v14 = vmul.f32 %v1941_v10, %v2075_v57  ;;  %v289_v35 = vmul.f32 %v1867_v3, %v2130_v48  ;;  %v264_v1 = vmul.f32 %v1859_v0, %v2075_v57  ;;  %v383_v53 = vmul.f32 %v1892_v22, %v2054_v49  ;;  %v210_v63 = vpop.permute.xlu0 %209 }
 0x12d   :  { %v274_v10 = vadd.f32 %v1988_v11, %v258_v54  ;;  %v375_v62 = vmul.f32 %v1888_v19, %v2054_v49  ;;  %v529_v0 = vadd.f32 %v527_v28, %v513_v20  ;;  %v313_v20 = vmul.f32 %v1876_v9, %v2161_v18 }
 0x12e   :  { %1537 = vset.pattern.permute.xlu1 %v1676_v50  ;;  %v2120_v50 = vmul.f32 %v1928_v55, %v2017_v43  ;;  %v259_v55 = vadd.f32 %v257_v25, %v243_v37  ;;  %v203_v43 = vsel %vm202_vm11, %v199_v5, %v201_v31  ;;  %v1677_v37 = vmov 104  }
 0x12f   :  { %830 = vperm.xlu1 %1537, %v1734_v2   ;;  %v2174_v30 = vsel %vm205_vm14, %v203_v43, 0.0  ;;  %v251_v25 = vadd.f32 %v249_v13, %v233_v52  ;;  %v250_v31 = vadd.f32 %v248_v42, %v232_v8  ;;  %v305_v43 = vmul.f32 %v1871_v7, %v2161_v18 }
 0x130   :  { %v275_v24 = vadd.f32 %v1993_v27, %v259_v55  ;;  %v399_v52 = vmul.f32 %v1898_v26, %v2075_v57  ;;  %v2190_v13 = vmul.f32 %v1954_v23, %v2130_v48  ;;  %v391_v27 = vmul.f32 %v1933_v59, %v2075_v57 }
 0x131   :  { %v267_v5 = vadd.f32 %v265_v12, %v251_v25  ;;  %v266_v42 = vadd.f32 %v264_v1, %v250_v31  ;;  %v1678_v8 = vmov 99   ;;  %v297_v55 = vmul.f32 %v1916_v39, %v2130_v48 }
 0x132   :  { %v291_v29 = vadd.f32 %v289_v35, %v275_v24  ;;  %v385_v54 = vadd.f32 %v383_v53, %v2097_v61  ;;  %v377_v28 = vadd.f32 %v375_v62, %v2101_v4  ;;  %v376_v12 = vmul.f32 %v1888_v19, %v2043_v56 }
 0x133   :  { %1538 = vset.pattern.permute.xlu1 %v1677_v37  ;;  %v2153_v6 = vpop.permute.xlu1 %571  ;;  %v283_v35 = vadd.f32 %v2002_v32, %v267_v5  ;;  %v312_v24 = vmul.f32 %v1876_v9, %v2174_v30  ;;  %v282_v61 = vadd.f32 %v1998_v58, %v266_v42  ;;  %v431_v9 = vmul.f32 %v1914_v38, %v2145_v40 }
 0x134   :  { %949 = vperm.xlu1 %1538, %v1734_v2   ;;  %v288_v2 = vmul.f32 %v1867_v3, %v2145_v40  ;;  %v304_v3 = vmul.f32 %v1871_v7, %v2174_v30  ;;  %v296_v7 = vmul.f32 %v1916_v39, %v2145_v40  ;;  %v307_v1 = vadd.f32 %v305_v43, %v291_v29 }
 0x135   :  { %v401_v25 = vadd.f32 %v399_v52, %v385_v54  ;;  %v393_v53 = vadd.f32 %v391_v27, %v377_v28  ;;  %v392_v39 = vmul.f32 %v1933_v59, %v2063_v47  ;;  %v423_v19 = vmul.f32 %v1908_v34, %v2145_v40  ;;  %v2717_v54 = vld [vmem:[#allocation12_spill] sm:$0xff] }
 0x136   :  { %v290_v37 = vadd.f32 %v288_v2, %v274_v10  ;;  %v2214_v10 = vpop.permute.xlu0 %563  ;;  %v378_v2 = vadd.f32 %v376_v12, %v2111_v46  ;;  %v384_v62 = vmul.f32 %v1892_v22, %v2043_v56  ;;  %v299_v52 = vadd.f32 %v297_v55, %v283_v35 }
 0x137   :  { %v417_v51 = vadd.f32 %v2009_v36, %v401_v25  ;;  %v298_v42 = vadd.f32 %v296_v7, %v282_v61  ;;  %v409_v44 = vadd.f32 %v2033_v21, %v393_v53  ;;  %v400_v46 = vmul.f32 %v1898_v26, %v2063_v47  ;;  %v2718_v36 = vld [vmem:[#allocation23_spill] sm:$0xff]  ;;  %v2719_v7 = vld [vmem:[#allocation13_spill] sm:$0xff] }
 0x138   :  { %v2192_v11 = vpop.permute.xlu1 %579  ;;  %1540 = vset.pattern.permute.xlu1 %v1678_v8  ;;  %v306_v8 = vadd.f32 %v304_v3, %v290_v37  ;;  %v394_v27 = vadd.f32 %v392_v39, %v378_v2  ;;  %v545_v55 = vadd.f32 %v2718_v36, %v529_v0  ;;  %v447_v28 = vmul.f32 %v2719_v7, %v2174_v30  ;;  %v2720_v21 = vld [vmem:[#allocation15_spill] sm:$0xff]  ;;  %v2722_v2 = vld [vmem:[#allocation16_spill] sm:$0xff] }
 0x139   :  { %v439_v12 = vmul.f32 %v2720_v21, %v2174_v30  ;;  %v386_v26 = vadd.f32 %v384_v62, %v2120_v50  ;;  %v314_v35 = vadd.f32 %v312_v24, %v298_v42  ;;  %v433_v25 = vadd.f32 %v431_v9, %v417_v51  ;;  %v2723_v62 = vld [vmem:[#allocation14_spill] sm:$0xff] }
 0x13a   :  { %v424_v0 = vmul.f32 %v1908_v34, %v2130_v48  ;;  %v528_v24 = vadd.f32 %v2165_v14, %v2134_v16  ;;  %v561_v9 = vadd.f32 %v2190_v13, %v545_v55  ;;  %v575_v34 = vmul.f32 %v2153_v6, %v2161_v18 }
 0x13b   :  { %v402_v53 = vadd.f32 %v400_v46, %v386_v26  ;;  %v440_v51 = vmul.f32 %v2720_v21, %v2161_v18  ;;  %v567_v42 = vmul.f32 %v2214_v10, %v2130_v48  ;;  %v432_v16 = vmul.f32 %v1914_v38, %v2130_v48 }
 0x13c   :  { %v212_v31 = vpop.permute.xlu1 %211  ;;  %v577_v55 = vadd.f32 %v575_v34, %v561_v9  ;;  %v583_v38 = vmul.f32 %v2192_v11, %v2161_v18  ;;  %v582_v34 = vmul.f32 %v2192_v11, %v2174_v30  ;;  %vm615_vm7 = vcmp.ge.s32.totalorder %v1962_v33, 16 }
 0x13d   :  { %v214_v4 = vsel %vm213_vm15, %v210_v63, %v212_v31  ;;  %v215_v32 = vsel %vm213_vm15, %v212_v31, %v210_v63  ;;  %v2245_v63 = vpop.permute.xlu0 %587  ;;  %v425_v31 = vadd.f32 %v423_v19, %v409_v44  ;;  %vm857_vm8 = vcmp.lt.s32.totalorder %v1962_v33, 112 }
 0x13e   :  { %v2226_v58 = vsel %vm216_vm0, %v214_v4, 0.0  ;;  %v2230_v59 = vsel %vm217_vm1, %v215_v32, 0.0  ;;  %vm992_vm9 = vcmp.lt.s32.totalorder %v1962_v33, 96  ;;  %vm1127_vm11 = vcmp.lt.s32.totalorder %v1962_v33, 80 }
 0x13f   :  { %v321_v43 = vmul.f32 %v1922_v45, %v2230_v59  ;;  %v320_v5 = vmul.f32 %v1922_v45, %v2226_v58  ;;  %v329_v37 = vmul.f32 %v2717_v54, %v2230_v59  ;;  %v328_v45 = vmul.f32 %v2717_v54, %v2226_v58 }
 0x140   :  { %v2240_v3 = vpop.permute.xlu1 %595  ;;  %v463_v50 = vmul.f32 %v2722_v2, %v2226_v58  ;;  %v456_v46 = vmul.f32 %v2723_v62, %v2230_v59 }
 0x141   :  { %v323_v22 = vadd.f32 %v321_v43, %v307_v1  ;;  %v322_v29 = vadd.f32 %v320_v5, %v306_v8  ;;  %v315_v1 = vadd.f32 %v313_v20, %v299_v52  ;;  %v2721_v8 = vld [vmem:[#allocation24_spill] sm:$0xff]  ;;  %v330_v32 = vadd.f32 %v328_v45, %v314_v35  ;;  %v635_v19 = vpop.permute.xlu0 %634  ;;  %v2727_v45 = vld [vmem:[#allocation25_spill] sm:$0xff] }
 0x142   :  { %v410_v61 = vadd.f32 %v2721_v8, %v394_v27  ;;  %v455_v43 = vmul.f32 %v2723_v62, %v2226_v58  ;;  %v537_v20 = vadd.f32 %v2149_v41, %v2126_v15  ;;  %v449_v5 = vadd.f32 %v447_v28, %v433_v25  ;;  %v2724_v41 = vld [vmem:[#allocation22_spill] sm:$0xff] }
 0x143   :  { %334 = vrot.lane.b32.xlu0 %v323_v22, %s1679_s20  ;;  %332 = vrot.lane.b32.xlu1 %v322_v29, %s1679_s20  ;;  %v331_v4 = vadd.f32 %v329_v37, %v315_v1  ;;  %v441_v52 = vadd.f32 %v439_v12, %v425_v31  ;;  %v418_v44 = vadd.f32 %v2724_v41, %v402_v53  ;;  %v2725_v22 = vld [vmem:[#allocation10_spill] sm:$0xff]  ;;  %v2726_v29 = vld [vmem:[#allocation19_spill] sm:$0xff] }
 0x144   :  { %v426_v15 = vadd.f32 %v424_v0, %v410_v61  ;;  %v465_v14 = vadd.f32 %v463_v50, %v449_v5  ;;  %v591_v27 = vmul.f32 %v2245_v63, %v2230_v59  ;;  %v542_v54 = vmul.f32 %v2726_v29, %v2725_v22  ;;  %v2728_v0 = vld [vmem:[#allocation17_spill] sm:$0xff] }
 0x145   :  { %v2260_v39 = vpop.permute.xlu1 %626  ;;  %v457_v13 = vadd.f32 %v455_v43, %v441_v52  ;;  %v536_v37 = vadd.f32 %v2140_v60, %v2124_v17  ;;  %v553_v36 = vadd.f32 %v2727_v45, %v537_v20  ;;  %v448_v12 = vmul.f32 %v2719_v7, %v2161_v18  ;;  %v659_v35 = vpop.permute.xlu0 %658  ;;  %v2729_v52 = vld [vmem:[#allocation20_spill] sm:$0xff] }
 0x146   :  { %v442_v21 = vadd.f32 %v440_v51, %v426_v15  ;;  %v558_v17 = vmul.f32 %v1954_v23, %v2145_v40  ;;  %v544_v60 = vadd.f32 %v542_v54, %v528_v24  ;;  %v434_v1 = vadd.f32 %v432_v16, %v418_v44 }
 0x147   :  { %341 = vrot.lane.b32.xlu0 %v331_v4, %s1679_s20  ;;  %339 = vrot.lane.b32.xlu1 %v330_v32, %s1679_s20  ;;  %v569_v26 = vadd.f32 %v567_v42, %v553_v36  ;;  %v599_v25 = vmul.f32 %v2240_v3, %v2230_v59  ;;  %v593_v31 = vadd.f32 %v591_v27, %v577_v55  ;;  %v2730_v42 = vld [vmem:[#allocation21_spill] sm:$0xff] }
 0x148   :  { %v458_v8 = vadd.f32 %v456_v46, %v442_v21  ;;  %v464_v61 = vmul.f32 %v2722_v2, %v2230_v59  ;;  %v550_v53 = vmul.f32 %v2728_v0, %v2725_v22  ;;  %v574_v7 = vmul.f32 %v2153_v6, %v2174_v30 }
 0x149   :  { %v566_v23 = vmul.f32 %v2214_v10, %v2145_v40  ;;  %v585_v4 = vadd.f32 %v583_v38, %v569_v26  ;;  %v450_v50 = vadd.f32 %v448_v12, %v434_v1  ;;  %v560_v43 = vadd.f32 %v558_v17, %v544_v60  ;;  %v683_v41 = vpop.permute.xlu0 %682  ;;  %v2334_v38 = vld [vmem:[%s2657_s1] sm:$0xff]  ;;  %s1705_s1 = smov 112  }
 0x14a   :  { %v643_v28 = vpop.permute.xlu1 %642  ;;  %v552_v62 = vadd.f32 %v550_v53, %v536_v37  ;;  %v590_v2 = vmul.f32 %v2245_v63, %v2226_v58  ;;  %v637_v51 = vmul.f32 %v635_v19, %v2729_v52  ;;  %v638_v15 = vmul.f32 %v635_v19, %v2730_v42  ;;  %v2731_v37 = vld [vmem:[#allocation11_spill] sm:$0xff] }
 0x14b   :  { %474 = vrot.lane.b32.xlu0 %v465_v14, %s1680_s21  ;;  %467 = vrot.lane.b32.xlu1 %v457_v13, %s1680_s21  ;;  %v601_v24 = vadd.f32 %v599_v25, %v585_v4  ;;  %v466_v9 = vadd.f32 %v464_v61, %v450_v50  ;;  %v576_v10 = vadd.f32 %v574_v7, %v560_v43  ;;  %v1682_v61 = vmov 111  }
 0x14c   :  { %v568_v5 = vadd.f32 %v566_v23, %v552_v62  ;;  %v598_v63 = vmul.f32 %v2240_v3, %v2226_v58  ;;  %v645_v44 = vmul.f32 %v643_v28, %v2054_v49  ;;  %v646_v16 = vmul.f32 %v643_v28, %v2043_v56 }
 0x14d   :  { %v592_v13 = vadd.f32 %v590_v2, %v576_v10  ;;  %v685_v54 = vmul.f32 %v683_v41, %v2725_v22  ;;  %v686_v45 = vmul.f32 %v683_v41, %v2731_v37  ;;  %v629_v3 = vmul.f32 %v2260_v39, %v2729_v52  ;;  %v707_v7 = vpop.permute.xlu0 %706 }
 0x14e   :  { %v584_v29 = vadd.f32 %v582_v34, %v568_v5  ;;  %v630_v36 = vmul.f32 %v2260_v39, %v2730_v42  ;;  %v661_v25 = vmul.f32 %v659_v35, %v2075_v57  ;;  %v662_v39 = vmul.f32 %v659_v35, %v2063_v47 }
 0x14f   :  { %v651_v32 = vpop.permute.xlu1 %650  ;;  %604 = vrot.lane.b32.xlu0 %v593_v31, %s1681_s22  ;;  %469 = vrot.lane.b32.xlu1 %v458_v8, %s1680_s21  ;;  %v647_v12 = vadd.f32 %v645_v44, %v629_v3  ;;  %v1683_v62 = vmov 106   ;;  %v709_v43 = vmul.f32 %v707_v7, %v2174_v30  ;;  %v710_v2 = vmul.f32 %v707_v7, %v2161_v18 }
 0x150   :  { %v653_v20 = vmul.f32 %v651_v32, %v2054_v49  ;;  %v654_v6 = vmul.f32 %v651_v32, %v2043_v56  ;;  %v600_v21 = vadd.f32 %v598_v63, %v584_v29  ;;  %v648_v26 = vadd.f32 %v646_v16, %v630_v36 }
 0x151   :  { %v663_v0 = vadd.f32 %v661_v25, %v647_v12  ;;  %v731_v41 = vpop.permute.xlu0 %730  ;;  %v1686_v44 = vmov 51   ;;  %v1688_v3 = vmov 52   ;;  %v1690_v12 = vmov 112  }
 0x152   :  { %v655_v11 = vadd.f32 %v653_v20, %v637_v51  ;;  %v656_v27 = vadd.f32 %v654_v6, %v638_v15  ;;  %v664_v53 = vadd.f32 %v662_v39, %v648_v26  ;;  %v1685_v15 = vmov 58  }
 0x153   :  { %611 = vrot.lane.b32.xlu0 %v601_v24, %s1681_s22  ;;  %476 = vrot.lane.b32.xlu1 %v466_v9, %s1680_s21  ;;  %v1684_v9 = vmov 105   ;;  %v1691_v26 = vmov 62  }
 0x154   :  { %v667_v14 = vpop.permute.xlu1 %666 }
 0x155   :  { %v669_v46 = vmul.f32 %v667_v14, %v2075_v57  ;;  %v670_v19 = vmul.f32 %v667_v14, %v2063_v47  ;;  %v759_v25 = vpop.permute.xlu0 %758 }
 0x157   :  { %v671_v55 = vadd.f32 %v669_v46, %v655_v11  ;;  %v672_v28 = vadd.f32 %v670_v19, %v656_v27  ;;  %1068 = vperm.xlu0 %1539, %v2334_v38   ;;  %602 = vrot.lane.b32.xlu1 %v592_v13, %s1681_s22  ;;  %v1687_v27 = vmov 54   ;;  %v733_v46 = vmul.f32 %v731_v41, %v2226_v58 }
 0x158   :  { %v734_v19 = vmul.f32 %v731_v41, %v2230_v59 }
 0x159   :  { %v675_v17 = vpop.permute.xlu1 %674  ;;  %v687_v60 = vadd.f32 %v685_v54, %v671_v55  ;;  %v688_v1 = vadd.f32 %v686_v45, %v672_v28  ;;  %v1689_v28 = vmov 61  }
 0x15a   :  { %v677_v31 = vmul.f32 %v675_v17, %v2725_v22  ;;  %v678_v8 = vmul.f32 %v675_v17, %v2731_v37 }
 0x15b   :  { %1542 = vset.pattern.permute.xlu0 %v1682_v61  ;;  %609 = vrot.lane.b32.xlu1 %v600_v21, %s1681_s22 }
 0x15c   :  { %1084 = vperm.xlu0 %1542, %v2334_v38   ;;  %v679_v4 = vadd.f32 %v677_v31, %v663_v0  ;;  %v680_v32 = vadd.f32 %v678_v8, %v664_v53  ;;  %v1694_v31 = vmov 59  }
 0x15e   :  { %v691_v23 = vpop.permute.xlu1 %690 }
 0x15f   :  { %v693_v50 = vmul.f32 %v691_v23, %v2145_v40  ;;  %v694_v35 = vmul.f32 %v691_v23, %v2130_v48  ;;  %846 = vperm.xlu1 %1540, %v2334_v38  }
 0x160   :  { %1545 = vset.pattern.permute.xlu0 %v1683_v62  ;;  %v762_v62 = vmul.f32 %v759_v25, %v2043_v56 }
 0x161   :  { %v695_v20 = vadd.f32 %v693_v50, %v679_v4  ;;  %v696_v6 = vadd.f32 %v694_v35, %v680_v32  ;;  %981 = vperm.xlu0 %1545, %v2334_v38   ;;  %v1695_v4 = vmov 116   ;;  %v761_v35 = vmul.f32 %v759_v25, %v2054_v49 }
 0x163   :  { %v699_v24 = vpop.permute.xlu1 %698  ;;  %1541 = vset.pattern.permute.xlu1 %v1684_v9  ;;  %v2350_v10 = vadd.f32 %v709_v43, %v695_v20  ;;  %v2352_v34 = vadd.f32 %v710_v2, %v696_v6  ;;  %v2390_v43 = vpop.permute.xlu0 %782  ;;  %v1696_v20 = vmov 113  }
 0x164   :  { %965 = vperm.xlu1 %1541, %v2334_v38   ;;  %v701_v5 = vmul.f32 %v699_v24, %v2145_v40  ;;  %v702_v51 = vmul.f32 %v699_v24, %v2130_v48 }
 0x165   :  { %1548 = vset.pattern.permute.xlu0 %v1685_v15 }
 0x166   :  { %1012 = vperm.xlu0 %1548, %v2334_v38   ;;  %v703_v16 = vadd.f32 %v701_v5, %v687_v60  ;;  %v704_v14 = vadd.f32 %v702_v51, %v688_v1  ;;  %v1692_v60 = vmov 53   ;;  %v1693_v1 = vmov 64  }
 0x167   :  { %v807_v41 = vpop.permute.xlu0 %806 }
 0x168   :  { %v715_v63 = vpop.permute.xlu1 %714  ;;  %1543 = vset.pattern.permute.xlu1 %v1686_v44  ;;  %v1697_v44 = vmov 60  }
 0x169   :  { %v717_v13 = vmul.f32 %v715_v63, %v2174_v30  ;;  %v718_v11 = vmul.f32 %v715_v63, %v2161_v18  ;;  %877 = vperm.xlu1 %1543, %v2334_v38  }
 0x16a   :  { %1551 = vset.pattern.permute.xlu0 %v1687_v27 }
 0x16b   :  { %v719_v29 = vadd.f32 %v717_v13, %v703_v16  ;;  %v720_v54 = vadd.f32 %v718_v11, %v704_v14  ;;  %925 = vperm.xlu0 %1551, %v2334_v38   ;;  %v809_v13 = vmul.f32 %v807_v41, %v2145_v40  ;;  %v810_v11 = vmul.f32 %v807_v41, %v2130_v48 }
 0x16d   :  { %v2364_v45 = vpop.permute.xlu1 %722  ;;  %1544 = vset.pattern.permute.xlu1 %v1688_v3  ;;  %v2366_v36 = vadd.f32 %v734_v19, %v720_v54  ;;  %v2368_v55 = vadd.f32 %v733_v46, %v719_v29  ;;  %v1698_v29 = vmov 55  }
 0x16e   :  { %893 = vperm.xlu1 %1544, %v2334_v38  }
 0x16f   :  { %1554 = vset.pattern.permute.xlu0 %v1689_v28 }
 0x170   :  { %1060 = vperm.xlu0 %1554, %v2334_v38  }
 0x172   :  { %v743_v21 = vpop.permute.xlu1 %742  ;;  %1546 = vset.pattern.permute.xlu1 %v1690_v12 }
 0x173   :  { %1100 = vperm.xlu1 %1546, %v2334_v38   ;;  %v745_v7 = vmul.f32 %v743_v21, %v2729_v52  ;;  %v746_v23 = vmul.f32 %v743_v21, %v2730_v42  ;;  %v1699_v21 = vmov 50  }
 0x174   :  { %1557 = vset.pattern.permute.xlu0 %v1691_v26  ;;  %v1700_v26 = vmov 56  }
 0x175   :  { %1076 = vperm.xlu0 %1557, %v2334_v38   ;;  %v763_v6 = vadd.f32 %v761_v35, %v745_v7  ;;  %v764_v24 = vadd.f32 %v762_v62, %v746_v23  ;;  %v2421_v7 = vpop.permute.xlu0 %885  ;;  %v1704_v23 = vmov 9  }
 0x177   :  { %v751_v17 = vpop.permute.xlu1 %750  ;;  %1547 = vset.pattern.permute.xlu1 %v1692_v60 }
 0x178   :  { %909 = vperm.xlu1 %1547, %v2334_v38   ;;  %v753_v8 = vmul.f32 %v751_v17, %v2729_v52  ;;  %v754_v61 = vmul.f32 %v751_v17, %v2730_v42 }
 0x179   :  { %1560 = vset.pattern.permute.xlu0 %v1693_v1  ;;  %v2425_v35 = vpop.permute.xlu0 %1020 }
 0x17a   :  { %1108 = vperm.xlu0 %1560, %v2334_v38  }
 0x17c   :  { %v767_v39 = vpop.permute.xlu1 %766  ;;  %1549 = vset.pattern.permute.xlu1 %v1694_v31 }
 0x17d   :  { %v769_v0 = vmul.f32 %v767_v39, %v2054_v49  ;;  %v770_v53 = vmul.f32 %v767_v39, %v2043_v56  ;;  %1028 = vperm.xlu1 %1549, %v2334_v38   ;;  %v1701_v39 = vmov 115  }
 0x17e   :  { %1561 = vset.pattern.permute.xlu0 %v1695_v4 }
 0x17f   :  { %v2383_v32 = vadd.f32 %v769_v0, %v753_v8  ;;  %v2385_v50 = vadd.f32 %v770_v53, %v754_v61  ;;  %1153 = vperm.xlu0 %1561, %v2334_v38   ;;  %v1702_v8 = vmov 57   ;;  %v1703_v0 = vmov 63  }
 0x181   :  { %v775_v2 = vpop.permute.xlu1 %774  ;;  %1550 = vset.pattern.permute.xlu1 %v1696_v20 }
 0x182   :  { %v777_v9 = vmul.f32 %v775_v2, %v2075_v57  ;;  %v778_v5 = vmul.f32 %v775_v2, %v2063_v47  ;;  %1116 = vperm.xlu1 %1550, %v2334_v38   ;;  %v2429_v2 = vpop.permute.xlu0 %1052 }
 0x183   :  { %1562 = vset.pattern.permute.xlu0 %v1701_v39 }
 0x184   :  { %v779_v51 = vadd.f32 %v777_v9, %v763_v6  ;;  %v780_v15 = vadd.f32 %v778_v5, %v764_v24 }
 0x186   :  { %v791_v63 = vpop.permute.xlu1 %790  ;;  %1552 = vset.pattern.permute.xlu1 %v1697_v44 }
 0x187   :  { %v793_v16 = vmul.f32 %v791_v63, %v2725_v22  ;;  %v794_v14 = vmul.f32 %v791_v63, %v2731_v37  ;;  %1044 = vperm.xlu1 %1552, %v2334_v38  }
 0x189   :  { %v795_v27 = vadd.f32 %v793_v16, %v779_v51  ;;  %v796_v46 = vadd.f32 %v794_v14, %v780_v15 }
 0x18b   :  { %v2400_v19 = vpop.permute.xlu1 %798  ;;  %1553 = vset.pattern.permute.xlu1 %v1698_v29  ;;  %v811_v54 = vadd.f32 %v809_v13, %v795_v27  ;;  %v812_v3 = vadd.f32 %v810_v11, %v796_v46 }
 0x18c   :  { %941 = vperm.xlu1 %1553, %v2334_v38  }
 0x190   :  { %v2403_v28 = vpop.permute.xlu1 %814  ;;  %1555 = vset.pattern.permute.xlu1 %v1699_v21 }
 0x191   :  { %838 = vperm.xlu1 %1555, %v2334_v38  }
 0x195   :  { %v823_v12 = vpop.permute.xlu1 %822  ;;  %1556 = vset.pattern.permute.xlu1 %v1700_v26  ;;  %v726_v26 = vmul.f32 %v2364_v45, %v2230_v59 }
 0x196   :  { %v825_v17 = vmul.f32 %v823_v12, %v2174_v30  ;;  %v826_v60 = vmul.f32 %v823_v12, %v2161_v18  ;;  %957 = vperm.xlu1 %1556, %v2334_v38  }
 0x198   :  { %v2409_v1 = vadd.f32 %v825_v17, %v811_v54  ;;  %v2411_v25 = vadd.f32 %v826_v60, %v812_v3 }
 0x19a   :  { %v2413_v31 = vpop.permute.xlu1 %901  ;;  %1558 = vset.pattern.permute.xlu1 %v1702_v8 }
 0x19b   :  { %973 = vperm.xlu1 %1558, %v2334_v38  }
 0x19f   :  { %v2416_v61 = vpop.permute.xlu1 %917  ;;  %1559 = vset.pattern.permute.xlu1 %v1703_v0  ;;  %v725_v0 = vmul.f32 %v2364_v45, %v2226_v58 }
 0x1a0   :  { %1092 = vperm.xlu1 %1559, %v2334_v38  }
 0x1a4   :  { %v2419_v53 = vpop.permute.xlu1 %1036  ;;  %1564 = vset.pattern.permute.xlu1 %v1704_v23 }
 0x1a9   :  { %v2423_v4 = vpop.permute.xlu1 %933 }
 0x1ae   :  { %v2427_v62 = vpop.permute.xlu1 %830 }
 0x1b3   :  { %v2431_v20 = vpop.permute.xlu1 %949 }
 0x1b5   :  { %v335_v6 = vpop.permute.xlu0 %334 }
 0x1b7   :  { %v333_v24 = vpop.permute.xlu1 %332 }
 0x1b8   :  { %v337_v9 = vsel %vm336_vm2, %v333_v24, %v335_v6  ;;  %v338_v5 = vsel %vm336_vm2, %v335_v6, %v333_v24 }
 0x1b9   :  { %v342_v51 = vpop.permute.xlu0 %341  ;;  %v347_v27 = vsel %vm345_vm4, %v338_v5, 0.0  ;;  %v728_v5 = vadd.f32 %v726_v26, %v2352_v34  ;;  %v817_v26 = vmul.f32 %v2403_v28, %v2145_v40 }
 0x1bb   :  { %v340_v15 = vpop.permute.xlu1 %339 }
 0x1bc   :  { %v343_v41 = vsel %vm336_vm2, %v340_v15, %v342_v51  ;;  %v344_v63 = vsel %vm336_vm2, %v342_v51, %v340_v15 }
 0x1bd   :  { %v475_v16 = vpop.permute.xlu0 %474  ;;  %v349_v17 = vsel %vm345_vm4, %v344_v63, 0.0  ;;  %v727_v63 = vadd.f32 %v725_v0, %v2350_v10  ;;  %v818_v0 = vmul.f32 %v2403_v28, %v2130_v48  ;;  %v921_v28 = vmul.f32 %v2416_v61, %v2063_v47 }
 0x1bf   :  { %v468_v44 = vpop.permute.xlu1 %467 }
 0x1c1   :  { %v605_v60 = vpop.permute.xlu0 %604 }
 0x1c3   :  { %v470_v14 = vpop.permute.xlu1 %469 }
 0x1c4   :  { %v472_v13 = vsel %vm471_vm3, %v468_v44, %v470_v14  ;;  %v473_v11 = vsel %vm471_vm3, %v470_v14, %v468_v44 }
 0x1c5   :  { %v482_v46 = vsel %vm480_vm5, %v473_v11, 0.0  ;;  %v487_v29 = vadd.f32 %v472_v13, %v337_v9  ;;  %v612_v44 = vpop.permute.xlu0 %611 }
 0x1c6   :  { %v486_v54 = vadd.f32 %v482_v46, %v347_v27 }
 0x1c7   :  { %v477_v3 = vpop.permute.xlu1 %476 }
 0x1c8   :  { %v478_v21 = vsel %vm471_vm3, %v475_v16, %v477_v3  ;;  %v479_v12 = vsel %vm471_vm3, %v477_v3, %v475_v16  ;;  %v801_v3 = vmul.f32 %v2400_v19, %v2725_v22 }
 0x1c9   :  { %v484_v39 = vsel %vm480_vm5, %v479_v12, 0.0  ;;  %v489_v8 = vadd.f32 %v478_v21, %v343_v41 }
 0x1ca   :  { %v488_v23 = vadd.f32 %v484_v39, %v349_v17  ;;  %v904_v17 = vmul.f32 %v2413_v31, %v2054_v49  ;;  %v833_v39 = vmul.f32 %v2427_v62, %v2174_v30 }
 0x1cb   :  { %v603_v6 = vpop.permute.xlu1 %602 }
 0x1cc   :  { %v607_v24 = vsel %vm606_vm6, %v603_v6, %v605_v60  ;;  %v608_v9 = vsel %vm606_vm6, %v605_v60, %v603_v6 }
 0x1cd   :  { %v617_v51 = vsel %vm615_vm7, %v608_v9, 0.0  ;;  %v622_v15 = vadd.f32 %v607_v24, %v487_v29  ;;  %v889_v24 = vmul.f32 %v2421_v7, %v2730_v42 }
 0x1ce   :  { %v621_v41 = vadd.f32 %v617_v51, %v486_v54  ;;  %v785_v54 = vmul.f32 %v2390_v43, %v2075_v57  ;;  %v936_v51 = vmul.f32 %v2423_v4, %v2725_v22 }
 0x1cf   :  { %v2453_v16 = vadd.f32 %v728_v5, %v622_v15  ;;  %v610_v45 = vpop.permute.xlu1 %609  ;;  %v834_v15 = vmul.f32 %v2427_v62, %v2161_v18  ;;  %v953_v62 = vmul.f32 %v2431_v20, %v2130_v48 }
 0x1d0   :  { %v613_v14 = vsel %vm606_vm6, %v610_v45, %v612_v44  ;;  %v614_v13 = vsel %vm606_vm6, %v612_v44, %v610_v45  ;;  %v2459_v11 = vadd.f32 %v727_v63, %v621_v41  ;;  %v787_v12 = vadd.f32 %v785_v54, %v2383_v32 }
 0x1d1   :  { %v619_v27 = vsel %vm615_vm7, %v614_v13, 0.0  ;;  %v624_v46 = vadd.f32 %v613_v14, %v489_v8  ;;  %v888_v8 = vmul.f32 %v2421_v7, %v2729_v52  ;;  %v952_v7 = vmul.f32 %v2431_v20, %v2145_v40 }
 0x1d2   :  { %v623_v34 = vadd.f32 %v619_v27, %v488_v23  ;;  %v803_v60 = vadd.f32 %v801_v3, %v787_v12  ;;  %v937_v14 = vmul.f32 %v2423_v4, %v2731_v37 }
 0x1d3   :  { %v2462_v29 = vadd.f32 %v2366_v36, %v624_v46  ;;  %v786_v36 = vmul.f32 %v2390_v43, %v2063_v47  ;;  %v920_v43 = vmul.f32 %v2416_v61, %v2075_v57  ;;  %v906_v5 = vadd.f32 %v904_v17, %v888_v8 }
 0x1d4   :  { %v2465_v10 = vadd.f32 %v2368_v55, %v623_v34  ;;  %v802_v55 = vmul.f32 %v2400_v19, %v2731_v37  ;;  %v819_v23 = vadd.f32 %v817_v26, %v803_v60  ;;  %v905_v19 = vmul.f32 %v2413_v31, %v2043_v56 }
 0x1d5   :  { %v788_v32 = vadd.f32 %v786_v36, %v2385_v50  ;;  %v922_v44 = vadd.f32 %v920_v43, %v906_v5  ;;  %v1023_v5 = vmul.f32 %v2425_v35, %v2729_v52 }
 0x1d6   :  { %v2471_v21 = vpop.permute.xlu0 %1068  ;;  %v835_v63 = vadd.f32 %v833_v39, %v819_v23  ;;  %v907_v45 = vadd.f32 %v905_v19, %v889_v24  ;;  %v1039_v24 = vmul.f32 %v2419_v53, %v2054_v49 }
 0x1d7   :  { %v804_v9 = vadd.f32 %v802_v55, %v788_v32  ;;  %v938_v46 = vadd.f32 %v936_v51, %v922_v44  ;;  %v1024_v51 = vmul.f32 %v2425_v35, %v2730_v42 }
 0x1d8   :  { %v923_v61 = vadd.f32 %v921_v28, %v907_v45  ;;  %v1041_v28 = vadd.f32 %v1039_v24, %v1023_v5 }
 0x1d9   :  { %v820_v31 = vadd.f32 %v818_v0, %v804_v9  ;;  %v954_v12 = vadd.f32 %v952_v7, %v938_v46  ;;  %v1040_v9 = vmul.f32 %v2419_v53, %v2043_v56  ;;  %v1072_v53 = vmul.f32 %v2471_v21, %v2731_v37 }
 0x1da   :  { %v939_v36 = vadd.f32 %v937_v14, %v923_v61 }
 0x1db   :  { %v1085_v6 = vpop.permute.xlu0 %1084  ;;  %v836_v34 = vadd.f32 %v834_v15, %v820_v31  ;;  %v1042_v15 = vadd.f32 %v1040_v9, %v1024_v51  ;;  %v1071_v31 = vmul.f32 %v2471_v21, %v2725_v22 }
 0x1dc   :  { %v955_v39 = vadd.f32 %v953_v62, %v939_v36  ;;  %v1087_v45 = vmul.f32 %v1085_v6, %v2145_v40  ;;  %v1088_v35 = vmul.f32 %v1085_v6, %v2130_v48 }
 0x1de   :  { %v847_v50 = vpop.permute.xlu1 %846 }
 0x1df   :  { %v849_v41 = vmul.f32 %v847_v50, %v2226_v58  ;;  %v850_v13 = vmul.f32 %v847_v50, %v2230_v59 }
 0x1e0   :  { %v982_v54 = vpop.permute.xlu0 %981 }
 0x1e1   :  { %v851_v27 = vadd.f32 %v849_v41, %v835_v63  ;;  %v852_v55 = vadd.f32 %v850_v13, %v836_v34  ;;  %v984_v17 = vmul.f32 %v982_v54, %v2226_v58  ;;  %v985_v0 = vmul.f32 %v982_v54, %v2230_v59 }
 0x1e2   :  { %v1055_v63 = vmul.f32 %v2429_v2, %v2075_v57  ;;  %v1056_v41 = vmul.f32 %v2429_v2, %v2063_v47 }
 0x1e3   :  { %860 = vrot.lane.b32.xlu1 %v851_v27, %s1705_s1  ;;  %v966_v3 = vpop.permute.xlu1 %965 }
 0x1e4   :  { %v968_v26 = vmul.f32 %v966_v3, %v2174_v30  ;;  %v969_v4 = vmul.f32 %v966_v3, %v2161_v18  ;;  %v1057_v44 = vadd.f32 %v1055_v63, %v1041_v28  ;;  %v1058_v7 = vadd.f32 %v1056_v41, %v1042_v15 }
 0x1e6   :  { %v970_v60 = vadd.f32 %v968_v26, %v954_v12  ;;  %v971_v32 = vadd.f32 %v969_v4, %v955_v39  ;;  %v1073_v13 = vadd.f32 %v1071_v31, %v1057_v44  ;;  %v1074_v27 = vadd.f32 %v1072_v53, %v1058_v7 }
 0x1e7   :  { %862 = vrot.lane.b32.xlu1 %v852_v55, %s1705_s1  ;;  %v1013_v55 = vpop.permute.xlu0 %1012 }
 0x1e8   :  { %v986_v8 = vadd.f32 %v984_v17, %v970_v60  ;;  %v878_v20 = vpop.permute.xlu1 %877  ;;  %v987_v43 = vadd.f32 %v985_v0, %v971_v32  ;;  %v1089_v2 = vadd.f32 %v1087_v45, %v1073_v13  ;;  %v1090_v34 = vadd.f32 %v1088_v35, %v1074_v27 }
 0x1e9   :  { %v880_v39 = vmul.f32 %v878_v20, %v2729_v52  ;;  %v881_v9 = vmul.f32 %v878_v20, %v2730_v42  ;;  %v1016_v53 = vmul.f32 %v1013_v55, %v2730_v42 }
 0x1eb   :  { %995 = vrot.lane.b32.xlu1 %v986_v8, %s1706_s25  ;;  %v926_v17 = vpop.permute.xlu0 %925 }
 0x1ed   :  { %v894_v23 = vpop.permute.xlu1 %893 }
 0x1ee   :  { %v896_v60 = vmul.f32 %v894_v23, %v2054_v49  ;;  %v897_v0 = vmul.f32 %v894_v23, %v2043_v56  ;;  %v1015_v23 = vmul.f32 %v1013_v55, %v2729_v52  ;;  %v1708_v55 = vmov 8  }
 0x1ef   :  { %997 = vrot.lane.b32.xlu1 %v987_v43, %s1706_s25  ;;  %v1061_v28 = vpop.permute.xlu0 %1060 }
 0x1f0   :  { %v898_v43 = vadd.f32 %v896_v60, %v880_v39  ;;  %v899_v7 = vadd.f32 %v897_v0, %v881_v9 }
 0x1f2   :  { %v1101_v19 = vpop.permute.xlu1 %1100 }
 0x1f3   :  { %v1103_v46 = vmul.f32 %v1101_v19, %v2174_v30  ;;  %v1104_v61 = vmul.f32 %v1101_v19, %v2161_v18 }
 0x1f5   :  { %v1105_v54 = vadd.f32 %v1103_v46, %v1089_v2  ;;  %v1106_v3 = vadd.f32 %v1104_v61, %v1090_v34  ;;  %v1063_v46 = vmul.f32 %v1061_v28, %v2725_v22  ;;  %v1064_v61 = vmul.f32 %v1061_v28, %v2731_v37 }
 0x1f6   :  { %v1714_v28 = vmov 13  }
 0x1f7   :  { %v910_v50 = vpop.permute.xlu1 %909 }
 0x1f8   :  { %v912_v8 = vmul.f32 %v910_v50, %v2075_v57  ;;  %v913_v15 = vmul.f32 %v910_v50, %v2063_v47 }
 0x1fa   :  { %v914_v63 = vadd.f32 %v912_v8, %v898_v43  ;;  %v915_v45 = vadd.f32 %v913_v15, %v899_v7  ;;  %v1715_v15 = vmov 15  }
 0x1fc   :  { %v1029_v14 = vpop.permute.xlu1 %1028 }
 0x1fd   :  { %v1031_v5 = vmul.f32 %v1029_v14, %v2054_v49  ;;  %v1032_v51 = vmul.f32 %v1029_v14, %v2043_v56  ;;  %v928_v49 = vmul.f32 %v926_v17, %v2725_v22  ;;  %v1077_v14 = vpop.permute.xlu0 %1076 }
 0x1fe   :  { %v1080_v22 = vmul.f32 %v1077_v14, %v2130_v48 }
 0x1ff   :  { %v1033_v50 = vadd.f32 %v1031_v5, %v1015_v23  ;;  %v930_v52 = vadd.f32 %v928_v49, %v914_v63 }
 0x201   :  { %v1117_v62 = vpop.permute.xlu1 %1116 }
 0x202   :  { %v1119_v21 = vmul.f32 %v1117_v62, %v2226_v58  ;;  %v1120_v12 = vmul.f32 %v1117_v62, %v2230_v59 }
 0x204   :  { %v1121_v26 = vadd.f32 %v1119_v21, %v1105_v54  ;;  %v1122_v36 = vadd.f32 %v1120_v12, %v1106_v3 }
 0x206   :  { %1132 = vrot.lane.b32.xlu1 %v1122_v36, %s1707_s26  ;;  %1130 = vrot.lane.b32.xlu0 %v1121_v26, %s1707_s26  ;;  %v1045_v6 = vpop.permute.xlu1 %1044 }
 0x207   :  { %v1047_v44 = vmul.f32 %v1045_v6, %v2075_v57  ;;  %v1048_v20 = vmul.f32 %v1045_v6, %v2063_v47  ;;  %v929_v47 = vmul.f32 %v926_v17, %v2731_v37  ;;  %v1109_v37 = vpop.permute.xlu0 %1108 }
 0x209   :  { %v1049_v35 = vadd.f32 %v1047_v44, %v1033_v50  ;;  %v931_v34 = vadd.f32 %v929_v47, %v915_v45  ;;  %v2732_v44 = vld [vmem:[#allocation18_spill] sm:$0xff] }
 0x20a   :  { %vm867_vm10 = vcmp.lt.s32.totalorder %v2732_v44, 240  ;;  %vm1002_vm12 = vcmp.lt.s32.totalorder %v2732_v44, 224  ;;  %vm1137_vm13 = vcmp.lt.s32.totalorder %v2732_v44, 208 }
 0x20b   :  { %v942_v4 = vpop.permute.xlu1 %941  ;;  %v1065_v21 = vadd.f32 %v1063_v46, %v1049_v35  ;;  %v1154_v23 = vpop.permute.xlu0 %1153 }
 0x20c   :  { %v944_v56 = vmul.f32 %v942_v4, %v2145_v40  ;;  %v945_v13 = vmul.f32 %v942_v4, %v2130_v48  ;;  %v1079_v4 = vmul.f32 %v1077_v14, %v2145_v40 }
 0x20e   :  { %v946_v27 = vadd.f32 %v944_v56, %v930_v52  ;;  %v947_v26 = vadd.f32 %v945_v13, %v931_v34  ;;  %v1081_v39 = vadd.f32 %v1079_v4, %v1065_v21 }
 0x210   :  { %v839_v32 = vpop.permute.xlu1 %838 }
 0x211   :  { %v841_v19 = vmul.f32 %v839_v32, %v2226_v58  ;;  %v842_v24 = vmul.f32 %v839_v32, %v2230_v59 }
 0x213   :  { %v843_v41 = vadd.f32 %v841_v19, %v2409_v1  ;;  %v844_v31 = vadd.f32 %v842_v24, %v2411_v25  ;;  %v1034_v25 = vadd.f32 %v1032_v51, %v1016_v53  ;;  %v1111_v19 = vmul.f32 %v1109_v37, %v2226_v58 }
 0x214   :  { %v1112_v24 = vmul.f32 %v1109_v37, %v2230_v59  ;;  %v1713_v51 = vmov 117  }
 0x215   :  { %855 = vrot.lane.b32.xlu1 %v844_v31, %s1705_s1  ;;  %853 = vrot.lane.b32.xlu0 %v843_v41, %s1705_s1  ;;  %v958_v1 = vpop.permute.xlu1 %957  ;;  %v1050_v57 = vadd.f32 %v1048_v20, %v1034_v25 }
 0x216   :  { %v960_v42 = vmul.f32 %v958_v1, %v2174_v30  ;;  %v961_v62 = vmul.f32 %v958_v1, %v2161_v18 }
 0x217   :  { %v1066_v12 = vadd.f32 %v1064_v61, %v1050_v57 }
 0x218   :  { %v962_v54 = vadd.f32 %v960_v42, %v946_v27  ;;  %v963_v17 = vadd.f32 %v961_v62, %v947_v26 }
 0x219   :  { %1147 = vperm.xlu0 %1562, %v2334_v38   ;;  %v1082_v8 = vadd.f32 %v1080_v22, %v1066_v12 }
 0x21a   :  { %v974_v2 = vpop.permute.xlu1 %973 }
 0x21b   :  { %v976_v3 = vmul.f32 %v974_v2, %v2226_v58  ;;  %v977_v36 = vmul.f32 %v974_v2, %v2230_v59  ;;  %v1711_v58 = vmov 14   ;;  %v1712_v59 = vmov 12  }
 0x21d   :  { %v978_v6 = vadd.f32 %v976_v3, %v962_v54  ;;  %1563 = vset.pattern.permute.xlu0 %v1708_v55  ;;  %v979_v43 = vadd.f32 %v977_v36, %v963_v17 }
 0x21f   :  { %988 = vrot.lane.b32.xlu1 %v978_v6, %s1706_s25  ;;  %v1093_v60 = vpop.permute.xlu1 %1092 }
 0x220   :  { %v1095_v32 = vmul.f32 %v1093_v60, %v2174_v30  ;;  %v1096_v0 = vmul.f32 %v1093_v60, %v2161_v18  ;;  %v1709_v18 = vmov 11   ;;  %v1710_v30 = vmov 10  }
 0x222   :  { %v1097_v9 = vadd.f32 %v1095_v32, %v1081_v39  ;;  %v1098_v40 = vadd.f32 %v1096_v0, %v1082_v8 }
 0x223   :  { %990 = vrot.lane.b32.xlu1 %v979_v43, %s1706_s25 }
 0x224   :  { %v1113_v48 = vadd.f32 %v1111_v19, %v1097_v9  ;;  %v1114_v5 = vadd.f32 %v1112_v24, %v1098_v40 }
 0x226   :  { %1123 = vrot.lane.b32.xlu0 %v1113_v48, %s1707_s26 }
 0x227   :  { %1125 = vrot.lane.b32.xlu1 %v1114_v5, %s1707_s26 }
 0x22a   :  { %1183 = vperm.xlu0 %1563, %v2334_v38  }
 0x22b   :  { %1199 = vperm.xlu1 %1564, %v2334_v38  }
 0x22e   :  { %1566 = vset.pattern.permute.xlu0 %v1709_v18 }
 0x22f   :  { %1565 = vset.pattern.permute.xlu1 %v1710_v30  ;;  %1231 = vperm.xlu0 %1566, %v2334_v38  }
 0x230   :  { %1215 = vperm.xlu1 %1565, %v2334_v38  }
 0x233   :  { %1569 = vset.pattern.permute.xlu0 %v1711_v58 }
 0x234   :  { %1567 = vset.pattern.permute.xlu1 %v1712_v59  ;;  %1279 = vperm.xlu0 %1569, %v2334_v38  }
 0x235   :  { %1247 = vperm.xlu1 %1567, %v2334_v38  }
 0x238   :  { %1572 = vset.pattern.permute.xlu0 %v1713_v51 }
 0x239   :  { %1568 = vset.pattern.permute.xlu1 %v1714_v28 }
 0x23a   :  { %1263 = vperm.xlu1 %1568, %v2334_v38  }
 0x23e   :  { %1570 = vset.pattern.permute.xlu1 %v1715_v15 }
 0x23f   :  { %1295 = vperm.xlu1 %1570, %v2334_v38  }
 0x243   :  { %1571 = vset.pattern.permute.xlu1 %v1713_v51 }
 0x244   :  { %1311 = vperm.xlu1 %1571, %v2334_v38  }
 0x255   :  { %v861_v63 = vpop.permute.xlu1 %860 }
 0x259   :  { %v863_v41 = vpop.permute.xlu1 %862 }
 0x25a   :  { %v865_v20 = vsel %vm857_vm8, %v863_v41, %v861_v63  ;;  %v864_v38 = vsel %vm857_vm8, %v861_v63, %v863_v41 }
 0x25b   :  { %v871_v1 = vsel %vm867_vm10, %v865_v20, 0.0  ;;  %v874_v45 = vadd.f32 %v864_v38, %v2465_v10  ;;  %v2733_v38 = vld [vmem:[#allocation3_spill] sm:$0xff] }
 0x25c   :  { %v875_v42 = vadd.f32 %v871_v1, %v2462_v29  ;;  %v2734_v1 = vld [vmem:[#allocation2_spill] sm:$0xff] }
 0x25d   :  { %v996_v31 = vpop.permute.xlu1 %995 }
 0x261   :  { %v998_v53 = vpop.permute.xlu1 %997 }
 0x262   :  { %v1000_v56 = vsel %vm992_vm9, %v998_v53, %v996_v31  ;;  %v999_v50 = vsel %vm992_vm9, %v996_v31, %v998_v53 }
 0x263   :  { %v1006_v52 = vsel %vm1002_vm12, %v1000_v56, 0.0  ;;  %v1009_v57 = vadd.f32 %v999_v50, %v874_v45 }
 0x264   :  { %v1010_v14 = vadd.f32 %v1006_v52, %v875_v42 }
 0x278   :  { %v1131_v49 = vpop.permute.xlu0 %1130  ;;  %v1133_v7 = vpop.permute.xlu1 %1132 }
 0x279   :  { %v1135_v25 = vsel %vm1127_vm11, %v1133_v7, %v1131_v49  ;;  %v1134_v35 = vsel %vm1127_vm11, %v1131_v49, %v1133_v7 }
 0x27a   :  { %v1141_v47 = vsel %vm1137_vm13, %v1135_v25, 0.0  ;;  %v1144_v13 = vadd.f32 %v1134_v35, %v1009_v57  ;;  %v2735_v25 = vld [vmem:[#allocation4_spill] sm:$0xff] }
 0x27b   :  { %v1145_v27 = vadd.f32 %v1141_v47, %v1010_v14  ;;  %v2736_v14 = vld [vmem:[#allocation5_spill] sm:$0xff] }
 0x27c   :  { %v1156_v61 = vadd.f32 %v1154_v23, %v1144_v13 }
 0x27d   :  { %v1157_v2 = vadd.f32 %v1154_v23, %v1145_v27 }
 0x27e   :  { %v1322_v62 = vmul.f32 -1.442695, %v1156_v61 }
 0x27f   :  { %v1323_v54 = vmul.f32 -1.442695, %v1157_v2 }
 0x280   :  { %1573 = vpow2.f32 %v1322_v62  ;;  %v2737_v62 = vld [vmem:[#allocation6_spill] sm:$0xff] }
 0x281   :  { %1575 = vpow2.f32 %v1323_v54 }
 0x287   :  { %v856_v46 = vpop.permute.xlu1 %855  ;;  %v854_v10 = vpop.permute.xlu0 %853 }
 0x288   :  { %v859_v29 = vsel %vm857_vm8, %v856_v46, %v854_v10  ;;  %v858_v21 = vsel %vm857_vm8, %v854_v10, %v856_v46 }
 0x289   :  { %v869_v26 = vsel %vm867_vm10, %v859_v29, 0.0  ;;  %v872_v55 = vadd.f32 %v858_v21, %v2459_v11 }
 0x28a   :  { %v873_v22 = vadd.f32 %v869_v26, %v2453_v16  ;;  %v1574_v24 = vpop.eup %1573 }
 0x28b   :  { %v1576_v40 = vpop.eup %1575  ;;  %v1174_v5 = vadd.f32 1.0, %v1574_v24 }
 0x28c   :  { %v1175_v18 = vadd.f32 1.0, %v1576_v40 }
 0x291   :  { %v989_v34 = vpop.permute.xlu1 %988 }
 0x295   :  { %v991_v3 = vpop.permute.xlu1 %990 }
 0x296   :  { %v994_v12 = vsel %vm992_vm9, %v991_v3, %v989_v34  ;;  %v993_v6 = vsel %vm992_vm9, %v989_v34, %v991_v3 }
 0x297   :  { %v1004_v4 = vsel %vm1002_vm12, %v994_v12, 0.0  ;;  %v1007_v37 = vadd.f32 %v993_v6, %v872_v55 }
 0x298   :  { %v1148_v36 = vpop.permute.xlu0 %1147  ;;  %v1008_v39 = vadd.f32 %v1004_v4, %v873_v22 }
 0x299   :  { %v1126_v17 = vpop.permute.xlu1 %1125 }
 0x29c   :  { %v1124_v60 = vpop.permute.xlu0 %1123 }
 0x29d   :  { %v1128_v8 = vsel %vm1127_vm11, %v1124_v60, %v1126_v17  ;;  %v1129_v32 = vsel %vm1127_vm11, %v1126_v17, %v1124_v60  ;;  %v2739_v60 = vld [vmem:[#allocation7_spill] sm:$0xff] }
 0x29e   :  { %v1139_v0 = vsel %vm1137_vm13, %v1129_v32, 0.0  ;;  %v1142_v43 = vadd.f32 %v1128_v8, %v1007_v37  ;;  %v2738_v37 = vld [vmem:[#allocation8_spill] sm:$0xff] }
 0x29f   :  { %v1143_v11 = vadd.f32 %v1139_v0, %v1008_v39 }
 0x2a0   :  { %v1150_v19 = vadd.f32 %v1148_v36, %v1142_v43 }
 0x2a1   :  { %v1151_v9 = vadd.f32 %v1148_v36, %v1143_v11 }
 0x2a2   :  { %v1160_v16 = vmul.f32 0.70710677, %v1150_v19  ;;  %v1158_v59 = vmul.f32 0.5, %v1150_v19 }
 0x2a3   :  { %v1161_v48 = vmul.f32 0.70710677, %v1151_v9  ;;  %v1159_v15 = vmul.f32 0.5, %v1151_v9 }
 0x2a4   :  { %1577 = verf.f32 %v1160_v16 }
 0x2a5   :  { %1579 = verf.f32 %v1161_v48 }
 0x2a6   :  { %1581 = vrcp.f32 %v1174_v5 }
 0x2a7   :  { %1583 = vrcp.f32 %v1175_v18  ;;  %v2740_v18 = vld [vmem:[#allocation9_spill] sm:$0xff] }
 0x2a9   :  { %v1184_v53 = vpop.permute.xlu0 %1183 }
 0x2aa   :  { %v1200_v30 = vpop.permute.xlu1 %1199 }
 0x2ae   :  { %v1578_v33 = vpop.eup %1577  ;;  %v1232_v61 = vpop.permute.xlu0 %1231 }
 0x2af   :  { %v1580_v58 = vpop.eup %1579  ;;  %v1164_v51 = vadd.f32 1.0, %v1578_v33  ;;  %v1216_v28 = vpop.permute.xlu1 %1215 }
 0x2b0   :  { %v1165_v63 = vadd.f32 1.0, %v1580_v58  ;;  %v1582_v31 = vpop.eup %1581 }
 0x2b1   :  { %v1166_v41 = vmul.f32 %v1164_v51, %v1158_v59  ;;  %v1584_v44 = vpop.eup %1583 }
 0x2b2   :  { %v1167_v23 = vmul.f32 %v1165_v63, %v1159_v15 }
 0x2b3   :  { %v1180_v20 = vmul.f32 %v1582_v31, %v1166_v41  ;;  %v1280_v0 = vpop.permute.xlu0 %1279 }
 0x2b4   :  { %v1181_v49 = vmul.f32 %v1584_v44, %v1167_v23  ;;  %v1248_v7 = vpop.permute.xlu1 %1247 }
 0x2b5   :  { %v1205_v56 = vrot.slane %v1180_v20, %v2733_v38  ;;  %v1189_v50 = vrot.slane %v1180_v20, %v2734_v1  ;;  %v1221_v45 = vrot.slane %v1180_v20, %v2735_v25  ;;  %v1237_v13 = vrot.slane %v1180_v20, %v2736_v14 }
 0x2b6   :  { %v1209_v52 = vrot.slane %v1181_v49, %v2733_v38  ;;  %v1193_v42 = vrot.slane %v1181_v49, %v2734_v1  ;;  %v1225_v35 = vrot.slane %v1181_v49, %v2735_v25  ;;  %v1241_v2 = vrot.slane %v1181_v49, %v2736_v14 }
 0x2b7   :  { %v1210_v57 = vmul.f32 %v1205_v56, %v1200_v30  ;;  %v1194_v47 = vmul.f32 %v1189_v50, %v1184_v53  ;;  %v1226_v10 = vmul.f32 %v1221_v45, %v1216_v28  ;;  %v1253_v54 = vrot.slane %v1180_v20, %v2737_v62 }
 0x2b8   :  { %v1211_v27 = vmul.f32 %v1209_v52, %v1200_v30  ;;  %v1195_v46 = vmul.f32 %v1193_v42, %v1184_v53  ;;  %v1227_v3 = vmul.f32 %v1225_v35, %v1216_v28  ;;  %v1257_v21 = vrot.slane %v1181_v49, %v2737_v62 }
 0x2b9   :  { %v1212_v34 = vadd.f32 %v1210_v57, %v1194_v47  ;;  %v1264_v12 = vpop.permute.xlu1 %1263  ;;  %v1242_v36 = vmul.f32 %v1237_v13, %v1232_v61  ;;  %v1243_v55 = vmul.f32 %v1241_v2, %v1232_v61  ;;  %v1258_v22 = vmul.f32 %v1253_v54, %v1248_v7 }
 0x2ba   :  { %v1213_v29 = vadd.f32 %v1211_v27, %v1195_v46  ;;  %v1285_v17 = vrot.slane %v1180_v20, %v2738_v37  ;;  %v1269_v39 = vrot.slane %v1180_v20, %v2739_v60  ;;  %v1259_v32 = vmul.f32 %v1257_v21, %v1248_v7 }
 0x2bb   :  { %v1228_v26 = vadd.f32 %v1226_v10, %v1212_v34  ;;  %v1289_v43 = vrot.slane %v1181_v49, %v2738_v37  ;;  %v1273_v11 = vrot.slane %v1181_v49, %v2739_v60  ;;  %v1301_v30 = vrot.slane %v1180_v20, %v2740_v18 }
 0x2bc   :  { %v1229_v6 = vadd.f32 %v1227_v3, %v1213_v29  ;;  %v1274_v24 = vmul.f32 %v1269_v39, %v1264_v12  ;;  %v1290_v48 = vmul.f32 %v1285_v17, %v1280_v0  ;;  %v1305_v59 = vrot.slane %v1181_v49, %v2740_v18 }
 0x2bd   :  { %v1244_v4 = vadd.f32 %v1242_v36, %v1228_v26  ;;  %v1275_v40 = vmul.f32 %v1273_v11, %v1264_v12  ;;  %v1291_v33 = vmul.f32 %v1289_v43, %v1280_v0 }
 0x2be   :  { %v1245_v8 = vadd.f32 %v1243_v55, %v1229_v6  ;;  %v1296_v16 = vpop.permute.xlu1 %1295 }
 0x2bf   :  { %v1260_v19 = vadd.f32 %v1258_v22, %v1244_v4  ;;  %v1306_v51 = vmul.f32 %v1301_v30, %v1296_v16  ;;  %v1307_v15 = vmul.f32 %v1305_v59, %v1296_v16 }
 0x2c0   :  { %v1261_v9 = vadd.f32 %v1259_v32, %v1245_v8 }
 0x2c1   :  { %v1276_v5 = vadd.f32 %v1274_v24, %v1260_v19 }
 0x2c2   :  { %v1277_v58 = vadd.f32 %v1275_v40, %v1261_v9 }
 0x2c3   :  { %v1292_v28 = vadd.f32 %v1290_v48, %v1276_v5  ;;  %v1312_v41 = vpop.permute.xlu1 %1311 }
 0x2c4   :  { %v1293_v63 = vadd.f32 %v1291_v33, %v1277_v58 }
 0x2c5   :  { %v1308_v31 = vadd.f32 %v1306_v51, %v1292_v28 }
 0x2c6   :  { %v1309_v23 = vadd.f32 %v1307_v15, %v1293_v63 }
 0x2c7   :  { %v1314_v53 = vadd.f32 %v1312_v41, %v1308_v31 }
 0x2c8   :  { %v1315_v44 = vadd.f32 %v1312_v41, %v1309_v23 }
 0x2c9   :  { %1316 = vst [vmem:[%s2659_s2] sm:$0xff] %v1314_v53 }
 0x2ca   :  { %1317 = vst [vmem:[%s2659_s2 + $0x8] sm:$0xff] %v1315_v44 }

</bundles_post_ra>
